<compile_context>
chip_gen: v7x
topology: tpu7x:2x2x1
jax: 0.10.0
libtpu: 0.0.40
codegen_flags: <defaults>
</compile_context>

<pallas_src>
import jax
import jax.numpy as jnp
from jax.experimental import pallas as pl
from jax.experimental.pallas import tpu as pltpu

LANE = 128      # lane width  (last-dim alignment)
SUBLANE = 8     # sublane width (second-to-last-dim alignment)


def _round_up(x, m):
    return ((x + m - 1) // m) * m


def _full_spec(shape):
    n = len(shape)
    return pl.BlockSpec(shape, lambda *_: (0,) * n)


# ------------------------- fused multi-layer LSTM + FC kernel -------------------------
def _build_fused_kernel(T, B, H, Gp, num_layers):
    """Inputs: x (T*B, D0p) bf16, then per layer (wx (d_in_p, Gp) bf16,
    wh (H, Gp) bf16, b (1, Gp) f32), then fc_w (H, Cp) bf16, fc_b (1, Cp) f32.
    Output: logits (B, Cp) f32.
    Scratch: hseq (T*B, H) f32 inter-layer sequence, gx (T*B, Gp) f32 hoisted
    packed-gate projection."""

    def kernel(*refs):
        x_ref = refs[0]
        layer_refs = refs[1:1 + 3 * num_layers]
        fcw_ref = refs[1 + 3 * num_layers]
        fcb_ref = refs[2 + 3 * num_layers]
        out_ref = refs[3 + 3 * num_layers]
        hseq_sc = refs[4 + 3 * num_layers]
        gx_sc = refs[5 + 3 * num_layers]

        # Lane-dependent pre-scale (hoisted constant): 0.5 on the sigmoid gate
        # lanes (i, f, o), 1.0 on the tanh gate lanes, so a single tanh pass
        # produces all four gate activations: sigmoid(x) = 0.5*(1 + tanh(x/2)).
        lane = jax.lax.broadcasted_iota(jnp.int32, (B, Gp), 1)
        gate_scale = jnp.where((lane >= 2 * H) & (lane < 3 * H),
                               jnp.float32(1.0), jnp.float32(0.5))

        h = None
        for layer in range(num_layers):
            wx_ref, wh_ref, b_ref = layer_refs[3 * layer:3 * layer + 3]
            is_last = layer == num_layers - 1

            # Time-parallel input projection (hoisted off the serial path):
            # one bf16 (T*B, D) @ (D, Gp) MXU matmul, f32 accumulate, bias
            # folded in once per layer.
            if layer == 0:
                xin = x_ref[...]                                  # already bf16
            else:
                xin = hseq_sc[...].astype(jnp.bfloat16)
            gx_sc[...] = (
                jnp.dot(xin, wx_ref[...], preferred_element_type=jnp.float32)
                + b_ref[...]
            )

            # Sequential recurrence; (h, c) live in vregs, static-T unrolled.
            # Only the tiny bf16 (B, H) @ (H, Gp) matmul + one tanh pass remain
            # on the serial per-step critical path.
            h = jnp.zeros((B, H), jnp.float32)
            c = jnp.zeros((B, H), jnp.float32)
            for t in range(T):
                g = gx_sc[t * B:(t + 1) * B, :] + jnp.dot(
                    h.astype(jnp.bfloat16), wh_ref[...],
                    preferred_element_type=jnp.float32)
                tg = jnp.tanh(g * gate_scale)        # single EUP pass / step
                sg = 0.5 * (tg + 1.0)                # sigmoid on i/f/o lanes
                # PyTorch gate order i, f, g, o — packed contiguously.
                gi = sg[:, 0 * H:1 * H]
                gf = sg[:, 1 * H:2 * H]
                gc = tg[:, 2 * H:3 * H]
                go = sg[:, 3 * H:4 * H]
                c = gf * c + gi * gc
                h = go * jnp.tanh(c)
                if not is_last:
                    hseq_sc[t * B:(t + 1) * B, :] = h   # next layer's input

        # Fused FC on the final hidden state -> lane-dense (B, Cp) output.
        out_ref[...] = (
            jnp.dot(h.astype(jnp.bfloat16), fcw_ref[...],
                    preferred_element_type=jnp.float32)
            + fcb_ref[...]
        )

    return kernel


# --------------------------------- parameters ---------------------------------
def init_params(key, input_size, hidden_size, num_layers, num_classes):
    """PyTorch-style U(-1/sqrt(H), 1/sqrt(H)) init.  Returns:
      padded: packed-gate, lane-aligned, bf16 kernel weights
      raw   : unpadded f32 weights for the pure-JAX reference."""
    H = hidden_size
    G = 4 * H
    Gp = _round_up(G, LANE)
    Cp = _round_up(num_classes, LANE)
    D0p = _round_up(input_size, LANE)
    bound = 1.0 / float(H) ** 0.5

    raw = {"layers": []}
    padded = {"layers": [], "H": H, "Gp": Gp, "C": num_classes,
              "Cp": Cp, "D0p": D0p}
    for layer in range(num_layers):
        d_in = input_size if layer == 0 else H
        d_in_p = D0p if layer == 0 else H
        key, k1, k2, k3, k4 = jax.random.split(key, 5)
        w_ih = jax.random.uniform(k1, (4 * H, d_in), jnp.float32, -bound, bound)
        w_hh = jax.random.uniform(k2, (4 * H, H), jnp.float32, -bound, bound)
        b_ih = jax.random.uniform(k3, (4 * H,), jnp.float32, -bound, bound)
        b_hh = jax.random.uniform(k4, (4 * H,), jnp.float32, -bound, bound)
        raw["layers"].append((w_ih, w_hh, b_ih, b_hh))

        # Gates packed contiguously in PyTorch order (i|f|g|o); zero tail pad
        # and zero padded input rows keep padded lanes inert.
        wx = jnp.zeros((d_in_p, Gp), jnp.float32).at[:d_in, :G].set(w_ih.T)
        wh = jnp.zeros((H, Gp), jnp.float32).at[:, :G].set(w_hh.T)
        b = jnp.zeros((1, Gp), jnp.float32).at[0, :G].set(b_ih + b_hh)
        padded["layers"].append({
            "wx": wx.astype(jnp.bfloat16),
            "wh": wh.astype(jnp.bfloat16),
            "b": b,                       # bias stays f32 (added post-accumulate)
        })

    key, k5, k6 = jax.random.split(key, 3)
    w_fc = jax.random.uniform(k5, (num_classes, H), jnp.float32, -bound, bound)
    b_fc = jax.random.uniform(k6, (num_classes,), jnp.float32, -bound, bound)
    raw["fc"] = (w_fc, b_fc)
    padded["fc_w"] = (jnp.zeros((H, Cp), jnp.float32)
                      .at[:, :num_classes].set(w_fc.T).astype(jnp.bfloat16))
    padded["fc_b"] = jnp.zeros((1, Cp), jnp.float32).at[0, :num_classes].set(b_fc)
    return padded, raw


# --------------------------------- forward pass ---------------------------------
def rnn_forward(params, x_btd):
    B_real, T, D0 = x_btd.shape
    Bp = _round_up(B_real, SUBLANE)
    H, Gp, Cp, D0p = params["H"], params["Gp"], params["Cp"], params["D0p"]
    num_layers = len(params["layers"])

    # Time-major, batch padded to a full sublane group, features padded to a
    # full lane group, flattened to (T*Bp, D0p) and cast to bf16 (MXU LHS).
    x = jnp.transpose(x_btd, (1, 0, 2)).astype(jnp.float32)      # (T, B, D0)
    x = jnp.pad(x, ((0, 0), (0, Bp - B_real), (0, D0p - D0)))
    x = x.reshape(T * Bp, D0p).astype(jnp.bfloat16)

    inputs = [x]
    specs = [_full_spec(x.shape)]
    for lp in params["layers"]:
        for name in ("wx", "wh", "b"):
            inputs.append(lp[name])
            specs.append(_full_spec(lp[name].shape))
    inputs += [params["fc_w"], params["fc_b"]]
    specs += [_full_spec(params["fc_w"].shape), _full_spec(params["fc_b"].shape)]

    kernel = _build_fused_kernel(T, Bp, H, Gp, num_layers)
    out = pl.pallas_call(
        kernel,
        out_shape=jax.ShapeDtypeStruct((Bp, Cp), jnp.float32),
        in_specs=specs,
        out_specs=_full_spec((Bp, Cp)),
        scratch_shapes=[
            pltpu.VMEM((T * Bp, H), jnp.float32),     # inter-layer h sequence
            pltpu.VMEM((T * Bp, Gp), jnp.float32),    # hoisted packed x-projection
        ],
        compiler_params=pltpu.CompilerParams(
            vmem_limit_bytes=32 * 1024 * 1024),
    )(*inputs)
    return out[:B_real, :params["C"]]


# --------------------------- pure-JAX reference (unpadded, f32) ---------------------------
def rnn_reference(raw, x_btd, hidden_size):
    H = hidden_size
    B, T, _ = x_btd.shape
    seq = x_btd.astype(jnp.float32)
    for (w_ih, w_hh, b_ih, b_hh) in raw["layers"]:
        h = jnp.zeros((B, H), jnp.float32)
        c = jnp.zeros((B, H), jnp.float32)
        outs = []
        for t in range(T):
            g = seq[:, t, :] @ w_ih.T + h @ w_hh.T + b_ih + b_hh
            i = jax.nn.sigmoid(g[:, 0 * H:1 * H])
            f = jax.nn.sigmoid(g[:, 1 * H:2 * H])
            gg = jnp.tanh(g[:, 2 * H:3 * H])
            o = jax.nn.sigmoid(g[:, 3 * H:4 * H])
            c = f * c + i * gg
            h = o * jnp.tanh(c)
            outs.append(h)
        seq = jnp.stack(outs, axis=1)
    w_fc, b_fc = raw["fc"]
    return seq[:, -1, :] @ w_fc.T + b_fc


if __name__ == "__main__":
    B, T, INPUT_SIZE, HIDDEN, NUM_LAYERS, NUM_CLASSES = 2, 8, 16, 32, 2, 10

    key = jax.random.PRNGKey(0)
    key, kx = jax.random.split(key)
    x = jax.random.normal(kx, (B, T, INPUT_SIZE), jnp.float32)

    params, raw = init_params(key, INPUT_SIZE, HIDDEN, NUM_LAYERS, NUM_CLASSES)

    out = rnn_forward(params, x)
    jax.block_until_ready(out)
    assert out.shape == (B, NUM_CLASSES)

    ref = rnn_reference(raw, x, HIDDEN)
    err = float(jnp.max(jnp.abs(out - ref)))
    # Tolerance set deliberately for bf16 MXU operands with f32 accumulation.
    assert jnp.allclose(out, ref, atol=5e-2, rtol=5e-2), f"max abs err {err}"

    print("KERNEL_OK")
</pallas_src>

<mosaic_0001>
module attributes {stable_mosaic.version = 11 : i64} {
  func.func @kernel(%arg0: memref<64x128xbf16, #tpu.memory_space<vmem>>, %arg1: memref<128x128xbf16, #tpu.memory_space<vmem>>, %arg2: memref<32x128xbf16, #tpu.memory_space<vmem>>, %arg3: memref<1x128xf32, #tpu.memory_space<vmem>>, %arg4: memref<32x128xbf16, #tpu.memory_space<vmem>>, %arg5: memref<32x128xbf16, #tpu.memory_space<vmem>>, %arg6: memref<1x128xf32, #tpu.memory_space<vmem>>, %arg7: memref<32x128xbf16, #tpu.memory_space<vmem>>, %arg8: memref<1x128xf32, #tpu.memory_space<vmem>>, %arg9: memref<8x128xf32, #tpu.memory_space<vmem>>, %arg10: memref<64x32xf32, #tpu.memory_space<vmem>>, %arg11: memref<64x128xf32, #tpu.memory_space<vmem>>) attributes {dimension_semantics = [], scalar_prefetch = 0 : i64, scratch_operands = 2 : i64, tpu.core_type = #tpu.core_type<tc>} {
    %0 = tpu.iota {dimensions = array<i32: 1>} : vector<8x128xi32>
    %c64_i32 = arith.constant 64 : i32
    %1 = vector.broadcast %c64_i32 : i32 to vector<8x128xi32>
    %2 = arith.cmpi sge, %0, %1 : vector<8x128xi32>
    %c96_i32 = arith.constant 96 : i32
    %3 = vector.broadcast %c96_i32 : i32 to vector<8x128xi32>
    %4 = arith.cmpi slt, %0, %3 : vector<8x128xi32>
    %5 = arith.andi %2, %4 : vector<8x128xi1>
    %cst = arith.constant 1.000000e+00 : f32
    %cst_0 = arith.constant 5.000000e-01 : f32
    %6 = vector.broadcast %cst : f32 to vector<8x128xf32>
    %7 = vector.broadcast %cst_0 : f32 to vector<8x128xf32>
    %8 = arith.select %5, %6, %7 : vector<8x128xi1>, vector<8x128xf32>
    %c0 = arith.constant 0 : index
    %c0_1 = arith.constant 0 : index
    %9 = vector.load %arg0[%c0, %c0_1] : memref<64x128xbf16, #tpu.memory_space<vmem>>, vector<64x128xbf16>
    %c0_2 = arith.constant 0 : index
    %c0_3 = arith.constant 0 : index
    %10 = vector.load %arg1[%c0_2, %c0_3] : memref<128x128xbf16, #tpu.memory_space<vmem>>, vector<128x128xbf16>
    %cst_4 = arith.constant dense<0.000000e+00> : vector<64x128xf32>
    %11 = tpu.matmul %9, %10, %cst_4 {dimension_numbers = #tpu.dot_dimension_numbers<[1], [0], [0], [1], [0, 0, 1, 1], [], []>} : vector<64x128xbf16>, vector<128x128xbf16>, vector<64x128xf32> -> vector<64x128xf32>
    %c0_5 = arith.constant 0 : index
    %c0_6 = arith.constant 0 : index
    %12 = vector.load %arg3[%c0_5, %c0_6] : memref<1x128xf32, #tpu.memory_space<vmem>>, vector<1x128xf32>
    %13 = vector.broadcast %12 : vector<1x128xf32> to vector<64x128xf32>
    %14 = arith.addf %11, %13 : vector<64x128xf32>
    %c0_7 = arith.constant 0 : index
    %c0_8 = arith.constant 0 : index
    %15 = vector.load %arg11[%c0_7, %c0_8] : memref<64x128xf32, #tpu.memory_space<vmem>>, vector<64x128xf32>
    tpu.vector_store %arg11[%c0_7, %c0_8], %14 {strides = array<i32>} : memref<64x128xf32, #tpu.memory_space<vmem>>, vector<64x128xf32>,
    %cst_9 = arith.constant 0.000000e+00 : f32
    %16 = vector.broadcast %cst_9 : f32 to vector<8x32xf32>
    %cst_10 = arith.constant 0.000000e+00 : f32
    %17 = vector.broadcast %cst_10 : f32 to vector<8x32xf32>
    %c0_11 = arith.constant 0 : index
    %c0_12 = arith.constant 0 : index
    %18 = vector.load %arg11[%c0_11, %c0_12] : memref<64x128xf32, #tpu.memory_space<vmem>>, vector<8x128xf32>
    %19 = arith.truncf %16 : vector<8x32xf32> to vector<8x32xbf16>
    %c0_13 = arith.constant 0 : index
    %c0_14 = arith.constant 0 : index
    %20 = vector.load %arg2[%c0_13, %c0_14] : memref<32x128xbf16, #tpu.memory_space<vmem>>, vector<32x128xbf16>
    %cst_15 = arith.constant dense<0.000000e+00> : vector<8x128xf32>
    %21 = tpu.matmul %19, %20, %cst_15 {dimension_numbers = #tpu.dot_dimension_numbers<[1], [0], [0], [1], [0, 0, 1, 1], [], []>} : vector<8x32xbf16>, vector<32x128xbf16>, vector<8x128xf32> -> vector<8x128xf32>
    %22 = arith.addf %18, %21 : vector<8x128xf32>
    %23 = arith.mulf %22, %8 : vector<8x128xf32>
    %24 = math.tanh %23 : vector<8x128xf32>
    %cst_16 = arith.constant 1.000000e+00 : f32
    %25 = vector.broadcast %cst_16 : f32 to vector<8x128xf32>
    %26 = arith.addf %24, %25 : vector<8x128xf32>
    %cst_17 = arith.constant 5.000000e-01 : f32
    %27 = vector.broadcast %cst_17 : f32 to vector<8x128xf32>
    %28 = arith.mulf %27, %26 : vector<8x128xf32>
    %29 = vector.extract_strided_slice %28 {offsets = [0, 0], sizes = [8, 32], strides = [1, 1]} : vector<8x128xf32> to vector<8x32xf32>
    %30 = vector.extract_strided_slice %28 {offsets = [0, 32], sizes = [8, 32], strides = [1, 1]} : vector<8x128xf32> to vector<8x32xf32>
    %31 = vector.extract_strided_slice %24 {offsets = [0, 64], sizes = [8, 32], strides = [1, 1]} : vector<8x128xf32> to vector<8x32xf32>
    %32 = vector.extract_strided_slice %28 {offsets = [0, 96], sizes = [8, 32], strides = [1, 1]} : vector<8x128xf32> to vector<8x32xf32>
    %33 = arith.mulf %30, %17 : vector<8x32xf32>
    %34 = arith.mulf %29, %31 : vector<8x32xf32>
    %35 = arith.addf %33, %34 : vector<8x32xf32>
    %36 = math.tanh %35 : vector<8x32xf32>
    %37 = arith.mulf %32, %36 : vector<8x32xf32>
    %c0_18 = arith.constant 0 : index
    %c0_19 = arith.constant 0 : index
    %38 = vector.load %arg10[%c0_18, %c0_19] : memref<64x32xf32, #tpu.memory_space<vmem>>, vector<8x32xf32>
    tpu.vector_store %arg10[%c0_18, %c0_19], %37 {strides = array<i32>} : memref<64x32xf32, #tpu.memory_space<vmem>>, vector<8x32xf32>,
    %c8 = arith.constant 8 : index
    %c0_20 = arith.constant 0 : index
    %39 = vector.load %arg11[%c8, %c0_20] : memref<64x128xf32, #tpu.memory_space<vmem>>, vector<8x128xf32>
    %40 = arith.truncf %37 : vector<8x32xf32> to vector<8x32xbf16>
    %c0_21 = arith.constant 0 : index
    %c0_22 = arith.constant 0 : index
    %41 = vector.load %arg2[%c0_21, %c0_22] : memref<32x128xbf16, #tpu.memory_space<vmem>>, vector<32x128xbf16>
    %cst_23 = arith.constant dense<0.000000e+00> : vector<8x128xf32>
    %42 = tpu.matmul %40, %41, %cst_23 {dimension_numbers = #tpu.dot_dimension_numbers<[1], [0], [0], [1], [0, 0, 1, 1], [], []>} : vector<8x32xbf16>, vector<32x128xbf16>, vector<8x128xf32> -> vector<8x128xf32>
    %43 = arith.addf %39, %42 : vector<8x128xf32>
    %44 = arith.mulf %43, %8 : vector<8x128xf32>
    %45 = math.tanh %44 : vector<8x128xf32>
    %cst_24 = arith.constant 1.000000e+00 : f32
    %46 = vector.broadcast %cst_24 : f32 to vector<8x128xf32>
    %47 = arith.addf %45, %46 : vector<8x128xf32>
    %cst_25 = arith.constant 5.000000e-01 : f32
    %48 = vector.broadcast %cst_25 : f32 to vector<8x128xf32>
    %49 = arith.mulf %48, %47 : vector<8x128xf32>
    %50 = vector.extract_strided_slice %49 {offsets = [0, 0], sizes = [8, 32], strides = [1, 1]} : vector<8x128xf32> to vector<8x32xf32>
    %51 = vector.extract_strided_slice %49 {offsets = [0, 32], sizes = [8, 32], strides = [1, 1]} : vector<8x128xf32> to vector<8x32xf32>
    %52 = vector.extract_strided_slice %45 {offsets = [0, 64], sizes = [8, 32], strides = [1, 1]} : vector<8x128xf32> to vector<8x32xf32>
    %53 = vector.extract_strided_slice %49 {offsets = [0, 96], sizes = [8, 32], strides = [1, 1]} : vector<8x128xf32> to vector<8x32xf32>
    %54 = arith.mulf %51, %35 : vector<8x32xf32>
    %55 = arith.mulf %50, %52 : vector<8x32xf32>
    %56 = arith.addf %54, %55 : vector<8x32xf32>
    %57 = math.tanh %56 : vector<8x32xf32>
    %58 = arith.mulf %53, %57 : vector<8x32xf32>
    %c8_26 = arith.constant 8 : index
    %c0_27 = arith.constant 0 : index
    %59 = vector.load %arg10[%c8_26, %c0_27] : memref<64x32xf32, #tpu.memory_space<vmem>>, vector<8x32xf32>
    tpu.vector_store %arg10[%c8_26, %c0_27], %58 {strides = array<i32>} : memref<64x32xf32, #tpu.memory_space<vmem>>, vector<8x32xf32>,
    %c16 = arith.constant 16 : index
    %c0_28 = arith.constant 0 : index
    %60 = vector.load %arg11[%c16, %c0_28] : memref<64x128xf32, #tpu.memory_space<vmem>>, vector<8x128xf32>
    %61 = arith.truncf %58 : vector<8x32xf32> to vector<8x32xbf16>
    %c0_29 = arith.constant 0 : index
    %c0_30 = arith.constant 0 : index
    %62 = vector.load %arg2[%c0_29, %c0_30] : memref<32x128xbf16, #tpu.memory_space<vmem>>, vector<32x128xbf16>
    %cst_31 = arith.constant dense<0.000000e+00> : vector<8x128xf32>
    %63 = tpu.matmul %61, %62, %cst_31 {dimension_numbers = #tpu.dot_dimension_numbers<[1], [0], [0], [1], [0, 0, 1, 1], [], []>} : vector<8x32xbf16>, vector<32x128xbf16>, vector<8x128xf32> -> vector<8x128xf32>
    %64 = arith.addf %60, %63 : vector<8x128xf32>
    %65 = arith.mulf %64, %8 : vector<8x128xf32>
    %66 = math.tanh %65 : vector<8x128xf32>
    %cst_32 = arith.constant 1.000000e+00 : f32
    %67 = vector.broadcast %cst_32 : f32 to vector<8x128xf32>
    %68 = arith.addf %66, %67 : vector<8x128xf32>
    %cst_33 = arith.constant 5.000000e-01 : f32
    %69 = vector.broadcast %cst_33 : f32 to vector<8x128xf32>
    %70 = arith.mulf %69, %68 : vector<8x128xf32>
    %71 = vector.extract_strided_slice %70 {offsets = [0, 0], sizes = [8, 32], strides = [1, 1]} : vector<8x128xf32> to vector<8x32xf32>
    %72 = vector.extract_strided_slice %70 {offsets = [0, 32], sizes = [8, 32], strides = [1, 1]} : vector<8x128xf32> to vector<8x32xf32>
    %73 = vector.extract_strided_slice %66 {offsets = [0, 64], sizes = [8, 32], strides = [1, 1]} : vector<8x128xf32> to vector<8x32xf32>
    %74 = vector.extract_strided_slice %70 {offsets = [0, 96], sizes = [8, 32], strides = [1, 1]} : vector<8x128xf32> to vector<8x32xf32>
    %75 = arith.mulf %72, %56 : vector<8x32xf32>
    %76 = arith.mulf %71, %73 : vector<8x32xf32>
    %77 = arith.addf %75, %76 : vector<8x32xf32>
    %78 = math.tanh %77 : vector<8x32xf32>
    %79 = arith.mulf %74, %78 : vector<8x32xf32>
    %c16_34 = arith.constant 16 : index
    %c0_35 = arith.constant 0 : index
    %80 = vector.load %arg10[%c16_34, %c0_35] : memref<64x32xf32, #tpu.memory_space<vmem>>, vector<8x32xf32>
    tpu.vector_store %arg10[%c16_34, %c0_35], %79 {strides = array<i32>} : memref<64x32xf32, #tpu.memory_space<vmem>>, vector<8x32xf32>,
    %c24 = arith.constant 24 : index
    %c0_36 = arith.constant 0 : index
    %81 = vector.load %arg11[%c24, %c0_36] : memref<64x128xf32, #tpu.memory_space<vmem>>, vector<8x128xf32>
    %82 = arith.truncf %79 : vector<8x32xf32> to vector<8x32xbf16>
    %c0_37 = arith.constant 0 : index
    %c0_38 = arith.constant 0 : index
    %83 = vector.load %arg2[%c0_37, %c0_38] : memref<32x128xbf16, #tpu.memory_space<vmem>>, vector<32x128xbf16>
    %cst_39 = arith.constant dense<0.000000e+00> : vector<8x128xf32>
    %84 = tpu.matmul %82, %83, %cst_39 {dimension_numbers = #tpu.dot_dimension_numbers<[1], [0], [0], [1], [0, 0, 1, 1], [], []>} : vector<8x32xbf16>, vector<32x128xbf16>, vector<8x128xf32> -> vector<8x128xf32>
    %85 = arith.addf %81, %84 : vector<8x128xf32>
    %86 = arith.mulf %85, %8 : vector<8x128xf32>
    %87 = math.tanh %86 : vector<8x128xf32>
    %cst_40 = arith.constant 1.000000e+00 : f32
    %88 = vector.broadcast %cst_40 : f32 to vector<8x128xf32>
    %89 = arith.addf %87, %88 : vector<8x128xf32>
    %cst_41 = arith.constant 5.000000e-01 : f32
    %90 = vector.broadcast %cst_41 : f32 to vector<8x128xf32>
    %91 = arith.mulf %90, %89 : vector<8x128xf32>
    %92 = vector.extract_strided_slice %91 {offsets = [0, 0], sizes = [8, 32], strides = [1, 1]} : vector<8x128xf32> to vector<8x32xf32>
    %93 = vector.extract_strided_slice %91 {offsets = [0, 32], sizes = [8, 32], strides = [1, 1]} : vector<8x128xf32> to vector<8x32xf32>
    %94 = vector.extract_strided_slice %87 {offsets = [0, 64], sizes = [8, 32], strides = [1, 1]} : vector<8x128xf32> to vector<8x32xf32>
    %95 = vector.extract_strided_slice %91 {offsets = [0, 96], sizes = [8, 32], strides = [1, 1]} : vector<8x128xf32> to vector<8x32xf32>
    %96 = arith.mulf %93, %77 : vector<8x32xf32>
    %97 = arith.mulf %92, %94 : vector<8x32xf32>
    %98 = arith.addf %96, %97 : vector<8x32xf32>
    %99 = math.tanh %98 : vector<8x32xf32>
    %100 = arith.mulf %95, %99 : vector<8x32xf32>
    %c24_42 = arith.constant 24 : index
    %c0_43 = arith.constant 0 : index
    %101 = vector.load %arg10[%c24_42, %c0_43] : memref<64x32xf32, #tpu.memory_space<vmem>>, vector<8x32xf32>
    tpu.vector_store %arg10[%c24_42, %c0_43], %100 {strides = array<i32>} : memref<64x32xf32, #tpu.memory_space<vmem>>, vector<8x32xf32>,
    %c32 = arith.constant 32 : index
    %c0_44 = arith.constant 0 : index
    %102 = vector.load %arg11[%c32, %c0_44] : memref<64x128xf32, #tpu.memory_space<vmem>>, vector<8x128xf32>
    %103 = arith.truncf %100 : vector<8x32xf32> to vector<8x32xbf16>
    %c0_45 = arith.constant 0 : index
    %c0_46 = arith.constant 0 : index
    %104 = vector.load %arg2[%c0_45, %c0_46] : memref<32x128xbf16, #tpu.memory_space<vmem>>, vector<32x128xbf16>
    %cst_47 = arith.constant dense<0.000000e+00> : vector<8x128xf32>
    %105 = tpu.matmul %103, %104, %cst_47 {dimension_numbers = #tpu.dot_dimension_numbers<[1], [0], [0], [1], [0, 0, 1, 1], [], []>} : vector<8x32xbf16>, vector<32x128xbf16>, vector<8x128xf32> -> vector<8x128xf32>
    %106 = arith.addf %102, %105 : vector<8x128xf32>
    %107 = arith.mulf %106, %8 : vector<8x128xf32>
    %108 = math.tanh %107 : vector<8x128xf32>
    %cst_48 = arith.constant 1.000000e+00 : f32
    %109 = vector.broadcast %cst_48 : f32 to vector<8x128xf32>
    %110 = arith.addf %108, %109 : vector<8x128xf32>
    %cst_49 = arith.constant 5.000000e-01 : f32
    %111 = vector.broadcast %cst_49 : f32 to vector<8x128xf32>
    %112 = arith.mulf %111, %110 : vector<8x128xf32>
    %113 = vector.extract_strided_slice %112 {offsets = [0, 0], sizes = [8, 32], strides = [1, 1]} : vector<8x128xf32> to vector<8x32xf32>
    %114 = vector.extract_strided_slice %112 {offsets = [0, 32], sizes = [8, 32], strides = [1, 1]} : vector<8x128xf32> to vector<8x32xf32>
    %115 = vector.extract_strided_slice %108 {offsets = [0, 64], sizes = [8, 32], strides = [1, 1]} : vector<8x128xf32> to vector<8x32xf32>
    %116 = vector.extract_strided_slice %112 {offsets = [0, 96], sizes = [8, 32], strides = [1, 1]} : vector<8x128xf32> to vector<8x32xf32>
    %117 = arith.mulf %114, %98 : vector<8x32xf32>
    %118 = arith.mulf %113, %115 : vector<8x32xf32>
    %119 = arith.addf %117, %118 : vector<8x32xf32>
    %120 = math.tanh %119 : vector<8x32xf32>
    %121 = arith.mulf %116, %120 : vector<8x32xf32>
    %c32_50 = arith.constant 32 : index
    %c0_51 = arith.constant 0 : index
    %122 = vector.load %arg10[%c32_50, %c0_51] : memref<64x32xf32, #tpu.memory_space<vmem>>, vector<8x32xf32>
    tpu.vector_store %arg10[%c32_50, %c0_51], %121 {strides = array<i32>} : memref<64x32xf32, #tpu.memory_space<vmem>>, vector<8x32xf32>,
    %c40 = arith.constant 40 : index
    %c0_52 = arith.constant 0 : index
    %123 = vector.load %arg11[%c40, %c0_52] : memref<64x128xf32, #tpu.memory_space<vmem>>, vector<8x128xf32>
    %124 = arith.truncf %121 : vector<8x32xf32> to vector<8x32xbf16>
    %c0_53 = arith.constant 0 : index
    %c0_54 = arith.constant 0 : index
    %125 = vector.load %arg2[%c0_53, %c0_54] : memref<32x128xbf16, #tpu.memory_space<vmem>>, vector<32x128xbf16>
    %cst_55 = arith.constant dense<0.000000e+00> : vector<8x128xf32>
    %126 = tpu.matmul %124, %125, %cst_55 {dimension_numbers = #tpu.dot_dimension_numbers<[1], [0], [0], [1], [0, 0, 1, 1], [], []>} : vector<8x32xbf16>, vector<32x128xbf16>, vector<8x128xf32> -> vector<8x128xf32>
    %127 = arith.addf %123, %126 : vector<8x128xf32>
    %128 = arith.mulf %127, %8 : vector<8x128xf32>
    %129 = math.tanh %128 : vector<8x128xf32>
    %cst_56 = arith.constant 1.000000e+00 : f32
    %130 = vector.broadcast %cst_56 : f32 to vector<8x128xf32>
    %131 = arith.addf %129, %130 : vector<8x128xf32>
    %cst_57 = arith.constant 5.000000e-01 : f32
    %132 = vector.broadcast %cst_57 : f32 to vector<8x128xf32>
    %133 = arith.mulf %132, %131 : vector<8x128xf32>
    %134 = vector.extract_strided_slice %133 {offsets = [0, 0], sizes = [8, 32], strides = [1, 1]} : vector<8x128xf32> to vector<8x32xf32>
    %135 = vector.extract_strided_slice %133 {offsets = [0, 32], sizes = [8, 32], strides = [1, 1]} : vector<8x128xf32> to vector<8x32xf32>
    %136 = vector.extract_strided_slice %129 {offsets = [0, 64], sizes = [8, 32], strides = [1, 1]} : vector<8x128xf32> to vector<8x32xf32>
    %137 = vector.extract_strided_slice %133 {offsets = [0, 96], sizes = [8, 32], strides = [1, 1]} : vector<8x128xf32> to vector<8x32xf32>
    %138 = arith.mulf %135, %119 : vector<8x32xf32>
    %139 = arith.mulf %134, %136 : vector<8x32xf32>
    %140 = arith.addf %138, %139 : vector<8x32xf32>
    %141 = math.tanh %140 : vector<8x32xf32>
    %142 = arith.mulf %137, %141 : vector<8x32xf32>
    %c40_58 = arith.constant 40 : index
    %c0_59 = arith.constant 0 : index
    %143 = vector.load %arg10[%c40_58, %c0_59] : memref<64x32xf32, #tpu.memory_space<vmem>>, vector<8x32xf32>
    tpu.vector_store %arg10[%c40_58, %c0_59], %142 {strides = array<i32>} : memref<64x32xf32, #tpu.memory_space<vmem>>, vector<8x32xf32>,
    %c48 = arith.constant 48 : index
    %c0_60 = arith.constant 0 : index
    %144 = vector.load %arg11[%c48, %c0_60] : memref<64x128xf32, #tpu.memory_space<vmem>>, vector<8x128xf32>
    %145 = arith.truncf %142 : vector<8x32xf32> to vector<8x32xbf16>
    %c0_61 = arith.constant 0 : index
    %c0_62 = arith.constant 0 : index
    %146 = vector.load %arg2[%c0_61, %c0_62] : memref<32x128xbf16, #tpu.memory_space<vmem>>, vector<32x128xbf16>
    %cst_63 = arith.constant dense<0.000000e+00> : vector<8x128xf32>
    %147 = tpu.matmul %145, %146, %cst_63 {dimension_numbers = #tpu.dot_dimension_numbers<[1], [0], [0], [1], [0, 0, 1, 1], [], []>} : vector<8x32xbf16>, vector<32x128xbf16>, vector<8x128xf32> -> vector<8x128xf32>
    %148 = arith.addf %144, %147 : vector<8x128xf32>
    %149 = arith.mulf %148, %8 : vector<8x128xf32>
    %150 = math.tanh %149 : vector<8x128xf32>
    %cst_64 = arith.constant 1.000000e+00 : f32
    %151 = vector.broadcast %cst_64 : f32 to vector<8x128xf32>
    %152 = arith.addf %150, %151 : vector<8x128xf32>
    %cst_65 = arith.constant 5.000000e-01 : f32
    %153 = vector.broadcast %cst_65 : f32 to vector<8x128xf32>
    %154 = arith.mulf %153, %152 : vector<8x128xf32>
    %155 = vector.extract_strided_slice %154 {offsets = [0, 0], sizes = [8, 32], strides = [1, 1]} : vector<8x128xf32> to vector<8x32xf32>
    %156 = vector.extract_strided_slice %154 {offsets = [0, 32], sizes = [8, 32], strides = [1, 1]} : vector<8x128xf32> to vector<8x32xf32>
    %157 = vector.extract_strided_slice %150 {offsets = [0, 64], sizes = [8, 32], strides = [1, 1]} : vector<8x128xf32> to vector<8x32xf32>
    %158 = vector.extract_strided_slice %154 {offsets = [0, 96], sizes = [8, 32], strides = [1, 1]} : vector<8x128xf32> to vector<8x32xf32>
    %159 = arith.mulf %156, %140 : vector<8x32xf32>
    %160 = arith.mulf %155, %157 : vector<8x32xf32>
    %161 = arith.addf %159, %160 : vector<8x32xf32>
    %162 = math.tanh %161 : vector<8x32xf32>
    %163 = arith.mulf %158, %162 : vector<8x32xf32>
    %c48_66 = arith.constant 48 : index
    %c0_67 = arith.constant 0 : index
    %164 = vector.load %arg10[%c48_66, %c0_67] : memref<64x32xf32, #tpu.memory_space<vmem>>, vector<8x32xf32>
    tpu.vector_store %arg10[%c48_66, %c0_67], %163 {strides = array<i32>} : memref<64x32xf32, #tpu.memory_space<vmem>>, vector<8x32xf32>,
    %c56 = arith.constant 56 : index
    %c0_68 = arith.constant 0 : index
    %165 = vector.load %arg11[%c56, %c0_68] : memref<64x128xf32, #tpu.memory_space<vmem>>, vector<8x128xf32>
    %166 = arith.truncf %163 : vector<8x32xf32> to vector<8x32xbf16>
    %c0_69 = arith.constant 0 : index
    %c0_70 = arith.constant 0 : index
    %167 = vector.load %arg2[%c0_69, %c0_70] : memref<32x128xbf16, #tpu.memory_space<vmem>>, vector<32x128xbf16>
    %cst_71 = arith.constant dense<0.000000e+00> : vector<8x128xf32>
    %168 = tpu.matmul %166, %167, %cst_71 {dimension_numbers = #tpu.dot_dimension_numbers<[1], [0], [0], [1], [0, 0, 1, 1], [], []>} : vector<8x32xbf16>, vector<32x128xbf16>, vector<8x128xf32> -> vector<8x128xf32>
    %169 = arith.addf %165, %168 : vector<8x128xf32>
    %170 = arith.mulf %169, %8 : vector<8x128xf32>
    %171 = math.tanh %170 : vector<8x128xf32>
    %cst_72 = arith.constant 1.000000e+00 : f32
    %172 = vector.broadcast %cst_72 : f32 to vector<8x128xf32>
    %173 = arith.addf %171, %172 : vector<8x128xf32>
    %cst_73 = arith.constant 5.000000e-01 : f32
    %174 = vector.broadcast %cst_73 : f32 to vector<8x128xf32>
    %175 = arith.mulf %174, %173 : vector<8x128xf32>
    %176 = vector.extract_strided_slice %175 {offsets = [0, 0], sizes = [8, 32], strides = [1, 1]} : vector<8x128xf32> to vector<8x32xf32>
    %177 = vector.extract_strided_slice %175 {offsets = [0, 32], sizes = [8, 32], strides = [1, 1]} : vector<8x128xf32> to vector<8x32xf32>
    %178 = vector.extract_strided_slice %171 {offsets = [0, 64], sizes = [8, 32], strides = [1, 1]} : vector<8x128xf32> to vector<8x32xf32>
    %179 = vector.extract_strided_slice %175 {offsets = [0, 96], sizes = [8, 32], strides = [1, 1]} : vector<8x128xf32> to vector<8x32xf32>
    %180 = arith.mulf %177, %161 : vector<8x32xf32>
    %181 = arith.mulf %176, %178 : vector<8x32xf32>
    %182 = arith.addf %180, %181 : vector<8x32xf32>
    %183 = math.tanh %182 : vector<8x32xf32>
    %184 = arith.mulf %179, %183 : vector<8x32xf32>
    %c56_74 = arith.constant 56 : index
    %c0_75 = arith.constant 0 : index
    %185 = vector.load %arg10[%c56_74, %c0_75] : memref<64x32xf32, #tpu.memory_space<vmem>>, vector<8x32xf32>
    tpu.vector_store %arg10[%c56_74, %c0_75], %184 {strides = array<i32>} : memref<64x32xf32, #tpu.memory_space<vmem>>, vector<8x32xf32>,
    %c0_76 = arith.constant 0 : index
    %c0_77 = arith.constant 0 : index
    %186 = vector.load %arg10[%c0_76, %c0_77] : memref<64x32xf32, #tpu.memory_space<vmem>>, vector<64x32xf32>
    %187 = arith.truncf %186 : vector<64x32xf32> to vector<64x32xbf16>
    %c0_78 = arith.constant 0 : index
    %c0_79 = arith.constant 0 : index
    %188 = vector.load %arg4[%c0_78, %c0_79] : memref<32x128xbf16, #tpu.memory_space<vmem>>, vector<32x128xbf16>
    %cst_80 = arith.constant dense<0.000000e+00> : vector<64x128xf32>
    %189 = tpu.matmul %187, %188, %cst_80 {dimension_numbers = #tpu.dot_dimension_numbers<[1], [0], [0], [1], [0, 0, 1, 1], [], []>} : vector<64x32xbf16>, vector<32x128xbf16>, vector<64x128xf32> -> vector<64x128xf32>
    %c0_81 = arith.constant 0 : index
    %c0_82 = arith.constant 0 : index
    %190 = vector.load %arg6[%c0_81, %c0_82] : memref<1x128xf32, #tpu.memory_space<vmem>>, vector<1x128xf32>
    %191 = vector.broadcast %190 : vector<1x128xf32> to vector<64x128xf32>
    %192 = arith.addf %189, %191 : vector<64x128xf32>
    %c0_83 = arith.constant 0 : index
    %c0_84 = arith.constant 0 : index
    %193 = vector.load %arg11[%c0_83, %c0_84] : memref<64x128xf32, #tpu.memory_space<vmem>>, vector<64x128xf32>
    tpu.vector_store %arg11[%c0_83, %c0_84], %192 {strides = array<i32>} : memref<64x128xf32, #tpu.memory_space<vmem>>, vector<64x128xf32>,
    %cst_85 = arith.constant 0.000000e+00 : f32
    %194 = vector.broadcast %cst_85 : f32 to vector<8x32xf32>
    %cst_86 = arith.constant 0.000000e+00 : f32
    %195 = vector.broadcast %cst_86 : f32 to vector<8x32xf32>
    %c0_87 = arith.constant 0 : index
    %c0_88 = arith.constant 0 : index
    %196 = vector.load %arg11[%c0_87, %c0_88] : memref<64x128xf32, #tpu.memory_space<vmem>>, vector<8x128xf32>
    %197 = arith.truncf %194 : vector<8x32xf32> to vector<8x32xbf16>
    %c0_89 = arith.constant 0 : index
    %c0_90 = arith.constant 0 : index
    %198 = vector.load %arg5[%c0_89, %c0_90] : memref<32x128xbf16, #tpu.memory_space<vmem>>, vector<32x128xbf16>
    %cst_91 = arith.constant dense<0.000000e+00> : vector<8x128xf32>
    %199 = tpu.matmul %197, %198, %cst_91 {dimension_numbers = #tpu.dot_dimension_numbers<[1], [0], [0], [1], [0, 0, 1, 1], [], []>} : vector<8x32xbf16>, vector<32x128xbf16>, vector<8x128xf32> -> vector<8x128xf32>
    %200 = arith.addf %196, %199 : vector<8x128xf32>
    %201 = arith.mulf %200, %8 : vector<8x128xf32>
    %202 = math.tanh %201 : vector<8x128xf32>
    %cst_92 = arith.constant 1.000000e+00 : f32
    %203 = vector.broadcast %cst_92 : f32 to vector<8x128xf32>
    %204 = arith.addf %202, %203 : vector<8x128xf32>
    %cst_93 = arith.constant 5.000000e-01 : f32
    %205 = vector.broadcast %cst_93 : f32 to vector<8x128xf32>
    %206 = arith.mulf %205, %204 : vector<8x128xf32>
    %207 = vector.extract_strided_slice %206 {offsets = [0, 0], sizes = [8, 32], strides = [1, 1]} : vector<8x128xf32> to vector<8x32xf32>
    %208 = vector.extract_strided_slice %206 {offsets = [0, 32], sizes = [8, 32], strides = [1, 1]} : vector<8x128xf32> to vector<8x32xf32>
    %209 = vector.extract_strided_slice %202 {offsets = [0, 64], sizes = [8, 32], strides = [1, 1]} : vector<8x128xf32> to vector<8x32xf32>
    %210 = vector.extract_strided_slice %206 {offsets = [0, 96], sizes = [8, 32], strides = [1, 1]} : vector<8x128xf32> to vector<8x32xf32>
    %211 = arith.mulf %208, %195 : vector<8x32xf32>
    %212 = arith.mulf %207, %209 : vector<8x32xf32>
    %213 = arith.addf %211, %212 : vector<8x32xf32>
    %214 = math.tanh %213 : vector<8x32xf32>
    %215 = arith.mulf %210, %214 : vector<8x32xf32>
    %c8_94 = arith.constant 8 : index
    %c0_95 = arith.constant 0 : index
    %216 = vector.load %arg11[%c8_94, %c0_95] : memref<64x128xf32, #tpu.memory_space<vmem>>, vector<8x128xf32>
    %217 = arith.truncf %215 : vector<8x32xf32> to vector<8x32xbf16>
    %c0_96 = arith.constant 0 : index
    %c0_97 = arith.constant 0 : index
    %218 = vector.load %arg5[%c0_96, %c0_97] : memref<32x128xbf16, #tpu.memory_space<vmem>>, vector<32x128xbf16>
    %cst_98 = arith.constant dense<0.000000e+00> : vector<8x128xf32>
    %219 = tpu.matmul %217, %218, %cst_98 {dimension_numbers = #tpu.dot_dimension_numbers<[1], [0], [0], [1], [0, 0, 1, 1], [], []>} : vector<8x32xbf16>, vector<32x128xbf16>, vector<8x128xf32> -> vector<8x128xf32>
    %220 = arith.addf %216, %219 : vector<8x128xf32>
    %221 = arith.mulf %220, %8 : vector<8x128xf32>
    %222 = math.tanh %221 : vector<8x128xf32>
    %cst_99 = arith.constant 1.000000e+00 : f32
    %223 = vector.broadcast %cst_99 : f32 to vector<8x128xf32>
    %224 = arith.addf %222, %223 : vector<8x128xf32>
    %cst_100 = arith.constant 5.000000e-01 : f32
    %225 = vector.broadcast %cst_100 : f32 to vector<8x128xf32>
    %226 = arith.mulf %225, %224 : vector<8x128xf32>
    %227 = vector.extract_strided_slice %226 {offsets = [0, 0], sizes = [8, 32], strides = [1, 1]} : vector<8x128xf32> to vector<8x32xf32>
    %228 = vector.extract_strided_slice %226 {offsets = [0, 32], sizes = [8, 32], strides = [1, 1]} : vector<8x128xf32> to vector<8x32xf32>
    %229 = vector.extract_strided_slice %222 {offsets = [0, 64], sizes = [8, 32], strides = [1, 1]} : vector<8x128xf32> to vector<8x32xf32>
    %230 = vector.extract_strided_slice %226 {offsets = [0, 96], sizes = [8, 32], strides = [1, 1]} : vector<8x128xf32> to vector<8x32xf32>
    %231 = arith.mulf %228, %213 : vector<8x32xf32>
    %232 = arith.mulf %227, %229 : vector<8x32xf32>
    %233 = arith.addf %231, %232 : vector<8x32xf32>
    %234 = math.tanh %233 : vector<8x32xf32>
    %235 = arith.mulf %230, %234 : vector<8x32xf32>
    %c16_101 = arith.constant 16 : index
    %c0_102 = arith.constant 0 : index
    %236 = vector.load %arg11[%c16_101, %c0_102] : memref<64x128xf32, #tpu.memory_space<vmem>>, vector<8x128xf32>
    %237 = arith.truncf %235 : vector<8x32xf32> to vector<8x32xbf16>
    %c0_103 = arith.constant 0 : index
    %c0_104 = arith.constant 0 : index
    %238 = vector.load %arg5[%c0_103, %c0_104] : memref<32x128xbf16, #tpu.memory_space<vmem>>, vector<32x128xbf16>
    %cst_105 = arith.constant dense<0.000000e+00> : vector<8x128xf32>
    %239 = tpu.matmul %237, %238, %cst_105 {dimension_numbers = #tpu.dot_dimension_numbers<[1], [0], [0], [1], [0, 0, 1, 1], [], []>} : vector<8x32xbf16>, vector<32x128xbf16>, vector<8x128xf32> -> vector<8x128xf32>
    %240 = arith.addf %236, %239 : vector<8x128xf32>
    %241 = arith.mulf %240, %8 : vector<8x128xf32>
    %242 = math.tanh %241 : vector<8x128xf32>
    %cst_106 = arith.constant 1.000000e+00 : f32
    %243 = vector.broadcast %cst_106 : f32 to vector<8x128xf32>
    %244 = arith.addf %242, %243 : vector<8x128xf32>
    %cst_107 = arith.constant 5.000000e-01 : f32
    %245 = vector.broadcast %cst_107 : f32 to vector<8x128xf32>
    %246 = arith.mulf %245, %244 : vector<8x128xf32>
    %247 = vector.extract_strided_slice %246 {offsets = [0, 0], sizes = [8, 32], strides = [1, 1]} : vector<8x128xf32> to vector<8x32xf32>
    %248 = vector.extract_strided_slice %246 {offsets = [0, 32], sizes = [8, 32], strides = [1, 1]} : vector<8x128xf32> to vector<8x32xf32>
    %249 = vector.extract_strided_slice %242 {offsets = [0, 64], sizes = [8, 32], strides = [1, 1]} : vector<8x128xf32> to vector<8x32xf32>
    %250 = vector.extract_strided_slice %246 {offsets = [0, 96], sizes = [8, 32], strides = [1, 1]} : vector<8x128xf32> to vector<8x32xf32>
    %251 = arith.mulf %248, %233 : vector<8x32xf32>
    %252 = arith.mulf %247, %249 : vector<8x32xf32>
    %253 = arith.addf %251, %252 : vector<8x32xf32>
    %254 = math.tanh %253 : vector<8x32xf32>
    %255 = arith.mulf %250, %254 : vector<8x32xf32>
    %c24_108 = arith.constant 24 : index
    %c0_109 = arith.constant 0 : index
    %256 = vector.load %arg11[%c24_108, %c0_109] : memref<64x128xf32, #tpu.memory_space<vmem>>, vector<8x128xf32>
    %257 = arith.truncf %255 : vector<8x32xf32> to vector<8x32xbf16>
    %c0_110 = arith.constant 0 : index
    %c0_111 = arith.constant 0 : index
    %258 = vector.load %arg5[%c0_110, %c0_111] : memref<32x128xbf16, #tpu.memory_space<vmem>>, vector<32x128xbf16>
    %cst_112 = arith.constant dense<0.000000e+00> : vector<8x128xf32>
    %259 = tpu.matmul %257, %258, %cst_112 {dimension_numbers = #tpu.dot_dimension_numbers<[1], [0], [0], [1], [0, 0, 1, 1], [], []>} : vector<8x32xbf16>, vector<32x128xbf16>, vector<8x128xf32> -> vector<8x128xf32>
    %260 = arith.addf %256, %259 : vector<8x128xf32>
    %261 = arith.mulf %260, %8 : vector<8x128xf32>
    %262 = math.tanh %261 : vector<8x128xf32>
    %cst_113 = arith.constant 1.000000e+00 : f32
    %263 = vector.broadcast %cst_113 : f32 to vector<8x128xf32>
    %264 = arith.addf %262, %263 : vector<8x128xf32>
    %cst_114 = arith.constant 5.000000e-01 : f32
    %265 = vector.broadcast %cst_114 : f32 to vector<8x128xf32>
    %266 = arith.mulf %265, %264 : vector<8x128xf32>
    %267 = vector.extract_strided_slice %266 {offsets = [0, 0], sizes = [8, 32], strides = [1, 1]} : vector<8x128xf32> to vector<8x32xf32>
    %268 = vector.extract_strided_slice %266 {offsets = [0, 32], sizes = [8, 32], strides = [1, 1]} : vector<8x128xf32> to vector<8x32xf32>
    %269 = vector.extract_strided_slice %262 {offsets = [0, 64], sizes = [8, 32], strides = [1, 1]} : vector<8x128xf32> to vector<8x32xf32>
    %270 = vector.extract_strided_slice %266 {offsets = [0, 96], sizes = [8, 32], strides = [1, 1]} : vector<8x128xf32> to vector<8x32xf32>
    %271 = arith.mulf %268, %253 : vector<8x32xf32>
    %272 = arith.mulf %267, %269 : vector<8x32xf32>
    %273 = arith.addf %271, %272 : vector<8x32xf32>
    %274 = math.tanh %273 : vector<8x32xf32>
    %275 = arith.mulf %270, %274 : vector<8x32xf32>
    %c32_115 = arith.constant 32 : index
    %c0_116 = arith.constant 0 : index
    %276 = vector.load %arg11[%c32_115, %c0_116] : memref<64x128xf32, #tpu.memory_space<vmem>>, vector<8x128xf32>
    %277 = arith.truncf %275 : vector<8x32xf32> to vector<8x32xbf16>
    %c0_117 = arith.constant 0 : index
    %c0_118 = arith.constant 0 : index
    %278 = vector.load %arg5[%c0_117, %c0_118] : memref<32x128xbf16, #tpu.memory_space<vmem>>, vector<32x128xbf16>
    %cst_119 = arith.constant dense<0.000000e+00> : vector<8x128xf32>
    %279 = tpu.matmul %277, %278, %cst_119 {dimension_numbers = #tpu.dot_dimension_numbers<[1], [0], [0], [1], [0, 0, 1, 1], [], []>} : vector<8x32xbf16>, vector<32x128xbf16>, vector<8x128xf32> -> vector<8x128xf32>
    %280 = arith.addf %276, %279 : vector<8x128xf32>
    %281 = arith.mulf %280, %8 : vector<8x128xf32>
    %282 = math.tanh %281 : vector<8x128xf32>
    %cst_120 = arith.constant 1.000000e+00 : f32
    %283 = vector.broadcast %cst_120 : f32 to vector<8x128xf32>
    %284 = arith.addf %282, %283 : vector<8x128xf32>
    %cst_121 = arith.constant 5.000000e-01 : f32
    %285 = vector.broadcast %cst_121 : f32 to vector<8x128xf32>
    %286 = arith.mulf %285, %284 : vector<8x128xf32>
    %287 = vector.extract_strided_slice %286 {offsets = [0, 0], sizes = [8, 32], strides = [1, 1]} : vector<8x128xf32> to vector<8x32xf32>
    %288 = vector.extract_strided_slice %286 {offsets = [0, 32], sizes = [8, 32], strides = [1, 1]} : vector<8x128xf32> to vector<8x32xf32>
    %289 = vector.extract_strided_slice %282 {offsets = [0, 64], sizes = [8, 32], strides = [1, 1]} : vector<8x128xf32> to vector<8x32xf32>
    %290 = vector.extract_strided_slice %286 {offsets = [0, 96], sizes = [8, 32], strides = [1, 1]} : vector<8x128xf32> to vector<8x32xf32>
    %291 = arith.mulf %288, %273 : vector<8x32xf32>
    %292 = arith.mulf %287, %289 : vector<8x32xf32>
    %293 = arith.addf %291, %292 : vector<8x32xf32>
    %294 = math.tanh %293 : vector<8x32xf32>
    %295 = arith.mulf %290, %294 : vector<8x32xf32>
    %c40_122 = arith.constant 40 : index
    %c0_123 = arith.constant 0 : index
    %296 = vector.load %arg11[%c40_122, %c0_123] : memref<64x128xf32, #tpu.memory_space<vmem>>, vector<8x128xf32>
    %297 = arith.truncf %295 : vector<8x32xf32> to vector<8x32xbf16>
    %c0_124 = arith.constant 0 : index
    %c0_125 = arith.constant 0 : index
    %298 = vector.load %arg5[%c0_124, %c0_125] : memref<32x128xbf16, #tpu.memory_space<vmem>>, vector<32x128xbf16>
    %cst_126 = arith.constant dense<0.000000e+00> : vector<8x128xf32>
    %299 = tpu.matmul %297, %298, %cst_126 {dimension_numbers = #tpu.dot_dimension_numbers<[1], [0], [0], [1], [0, 0, 1, 1], [], []>} : vector<8x32xbf16>, vector<32x128xbf16>, vector<8x128xf32> -> vector<8x128xf32>
    %300 = arith.addf %296, %299 : vector<8x128xf32>
    %301 = arith.mulf %300, %8 : vector<8x128xf32>
    %302 = math.tanh %301 : vector<8x128xf32>
    %cst_127 = arith.constant 1.000000e+00 : f32
    %303 = vector.broadcast %cst_127 : f32 to vector<8x128xf32>
    %304 = arith.addf %302, %303 : vector<8x128xf32>
    %cst_128 = arith.constant 5.000000e-01 : f32
    %305 = vector.broadcast %cst_128 : f32 to vector<8x128xf32>
    %306 = arith.mulf %305, %304 : vector<8x128xf32>
    %307 = vector.extract_strided_slice %306 {offsets = [0, 0], sizes = [8, 32], strides = [1, 1]} : vector<8x128xf32> to vector<8x32xf32>
    %308 = vector.extract_strided_slice %306 {offsets = [0, 32], sizes = [8, 32], strides = [1, 1]} : vector<8x128xf32> to vector<8x32xf32>
    %309 = vector.extract_strided_slice %302 {offsets = [0, 64], sizes = [8, 32], strides = [1, 1]} : vector<8x128xf32> to vector<8x32xf32>
    %310 = vector.extract_strided_slice %306 {offsets = [0, 96], sizes = [8, 32], strides = [1, 1]} : vector<8x128xf32> to vector<8x32xf32>
    %311 = arith.mulf %308, %293 : vector<8x32xf32>
    %312 = arith.mulf %307, %309 : vector<8x32xf32>
    %313 = arith.addf %311, %312 : vector<8x32xf32>
    %314 = math.tanh %313 : vector<8x32xf32>
    %315 = arith.mulf %310, %314 : vector<8x32xf32>
    %c48_129 = arith.constant 48 : index
    %c0_130 = arith.constant 0 : index
    %316 = vector.load %arg11[%c48_129, %c0_130] : memref<64x128xf32, #tpu.memory_space<vmem>>, vector<8x128xf32>
    %317 = arith.truncf %315 : vector<8x32xf32> to vector<8x32xbf16>
    %c0_131 = arith.constant 0 : index
    %c0_132 = arith.constant 0 : index
    %318 = vector.load %arg5[%c0_131, %c0_132] : memref<32x128xbf16, #tpu.memory_space<vmem>>, vector<32x128xbf16>
    %cst_133 = arith.constant dense<0.000000e+00> : vector<8x128xf32>
    %319 = tpu.matmul %317, %318, %cst_133 {dimension_numbers = #tpu.dot_dimension_numbers<[1], [0], [0], [1], [0, 0, 1, 1], [], []>} : vector<8x32xbf16>, vector<32x128xbf16>, vector<8x128xf32> -> vector<8x128xf32>
    %320 = arith.addf %316, %319 : vector<8x128xf32>
    %321 = arith.mulf %320, %8 : vector<8x128xf32>
    %322 = math.tanh %321 : vector<8x128xf32>
    %cst_134 = arith.constant 1.000000e+00 : f32
    %323 = vector.broadcast %cst_134 : f32 to vector<8x128xf32>
    %324 = arith.addf %322, %323 : vector<8x128xf32>
    %cst_135 = arith.constant 5.000000e-01 : f32
    %325 = vector.broadcast %cst_135 : f32 to vector<8x128xf32>
    %326 = arith.mulf %325, %324 : vector<8x128xf32>
    %327 = vector.extract_strided_slice %326 {offsets = [0, 0], sizes = [8, 32], strides = [1, 1]} : vector<8x128xf32> to vector<8x32xf32>
    %328 = vector.extract_strided_slice %326 {offsets = [0, 32], sizes = [8, 32], strides = [1, 1]} : vector<8x128xf32> to vector<8x32xf32>
    %329 = vector.extract_strided_slice %322 {offsets = [0, 64], sizes = [8, 32], strides = [1, 1]} : vector<8x128xf32> to vector<8x32xf32>
    %330 = vector.extract_strided_slice %326 {offsets = [0, 96], sizes = [8, 32], strides = [1, 1]} : vector<8x128xf32> to vector<8x32xf32>
    %331 = arith.mulf %328, %313 : vector<8x32xf32>
    %332 = arith.mulf %327, %329 : vector<8x32xf32>
    %333 = arith.addf %331, %332 : vector<8x32xf32>
    %334 = math.tanh %333 : vector<8x32xf32>
    %335 = arith.mulf %330, %334 : vector<8x32xf32>
    %c56_136 = arith.constant 56 : index
    %c0_137 = arith.constant 0 : index
    %336 = vector.load %arg11[%c56_136, %c0_137] : memref<64x128xf32, #tpu.memory_space<vmem>>, vector<8x128xf32>
    %337 = arith.truncf %335 : vector<8x32xf32> to vector<8x32xbf16>
    %c0_138 = arith.constant 0 : index
    %c0_139 = arith.constant 0 : index
    %338 = vector.load %arg5[%c0_138, %c0_139] : memref<32x128xbf16, #tpu.memory_space<vmem>>, vector<32x128xbf16>
    %cst_140 = arith.constant dense<0.000000e+00> : vector<8x128xf32>
    %339 = tpu.matmul %337, %338, %cst_140 {dimension_numbers = #tpu.dot_dimension_numbers<[1], [0], [0], [1], [0, 0, 1, 1], [], []>} : vector<8x32xbf16>, vector<32x128xbf16>, vector<8x128xf32> -> vector<8x128xf32>
    %340 = arith.addf %336, %339 : vector<8x128xf32>
    %341 = arith.mulf %340, %8 : vector<8x128xf32>
    %342 = math.tanh %341 : vector<8x128xf32>
    %cst_141 = arith.constant 1.000000e+00 : f32
    %343 = vector.broadcast %cst_141 : f32 to vector<8x128xf32>
    %344 = arith.addf %342, %343 : vector<8x128xf32>
    %cst_142 = arith.constant 5.000000e-01 : f32
    %345 = vector.broadcast %cst_142 : f32 to vector<8x128xf32>
    %346 = arith.mulf %345, %344 : vector<8x128xf32>
    %347 = vector.extract_strided_slice %346 {offsets = [0, 0], sizes = [8, 32], strides = [1, 1]} : vector<8x128xf32> to vector<8x32xf32>
    %348 = vector.extract_strided_slice %346 {offsets = [0, 32], sizes = [8, 32], strides = [1, 1]} : vector<8x128xf32> to vector<8x32xf32>
    %349 = vector.extract_strided_slice %342 {offsets = [0, 64], sizes = [8, 32], strides = [1, 1]} : vector<8x128xf32> to vector<8x32xf32>
    %350 = vector.extract_strided_slice %346 {offsets = [0, 96], sizes = [8, 32], strides = [1, 1]} : vector<8x128xf32> to vector<8x32xf32>
    %351 = arith.mulf %348, %333 : vector<8x32xf32>
    %352 = arith.mulf %347, %349 : vector<8x32xf32>
    %353 = arith.addf %351, %352 : vector<8x32xf32>
    %354 = math.tanh %353 : vector<8x32xf32>
    %355 = arith.mulf %350, %354 : vector<8x32xf32>
    %356 = arith.truncf %355 : vector<8x32xf32> to vector<8x32xbf16>
    %c0_143 = arith.constant 0 : index
    %c0_144 = arith.constant 0 : index
    %357 = vector.load %arg7[%c0_143, %c0_144] : memref<32x128xbf16, #tpu.memory_space<vmem>>, vector<32x128xbf16>
    %cst_145 = arith.constant dense<0.000000e+00> : vector<8x128xf32>
    %358 = tpu.matmul %356, %357, %cst_145 {dimension_numbers = #tpu.dot_dimension_numbers<[1], [0], [0], [1], [0, 0, 1, 1], [], []>} : vector<8x32xbf16>, vector<32x128xbf16>, vector<8x128xf32> -> vector<8x128xf32>
    %c0_146 = arith.constant 0 : index
    %c0_147 = arith.constant 0 : index
    %359 = vector.load %arg8[%c0_146, %c0_147] : memref<1x128xf32, #tpu.memory_space<vmem>>, vector<1x128xf32>
    %360 = vector.broadcast %359 : vector<1x128xf32> to vector<8x128xf32>
    %361 = arith.addf %358, %360 : vector<8x128xf32>
    %c0_148 = arith.constant 0 : index
    %c0_149 = arith.constant 0 : index
    %362 = vector.load %arg9[%c0_148, %c0_149] : memref<8x128xf32, #tpu.memory_space<vmem>>, vector<8x128xf32>
    tpu.vector_store %arg9[%c0_148, %c0_149], %361 {strides = array<i32>} : memref<8x128xf32, #tpu.memory_space<vmem>>, vector<8x128xf32>,
    return
  }
}

</mosaic_0001>

<bundles_post_ra>
// kernel: tpu_custom_call.1
= control target key start
LH: loop header
LB: loop body
LE: loop exit
PB: predicated region body
PF: predicated region fallthrough
CT: control target
= control target key end

     0   :  { %14 = vsyncpa [#allocation5], 0  ;;  %s2808_s0 = inlined_call_operand.hbm [shape: bf16[64,128], index: 0, kind: input, shape index: {}]   ;;  %s2809_s1 = inlined_call_operand.hbm [shape: bf16[128,128], index: 1, kind: input, shape index: {}]   ;;  %s2810_s2 = inlined_call_operand.hbm [shape: bf16[32,128], index: 2, kind: input, shape index: {}]   ;;  %s2811_s3 = inlined_call_operand.vmem [shape: f32[1,128], index: 3, kind: input, shape index: {}]   ;;  %s2812_s4 = inlined_call_operand.hbm [shape: bf16[32,128], index: 4, kind: input, shape index: {}]   ;;  %s2813_s5 = inlined_call_operand.vmem [shape: bf16[32,128], index: 5, kind: input, shape index: {}]   ;;  %s2814_s6 = inlined_call_operand.vmem [shape: f32[1,128], index: 6, kind: input, shape index: {}]   ;;  %s2815_s7 = inlined_call_operand.hbm [shape: bf16[32,128], index: 7, kind: input, shape index: {}]   ;;  %s2816_s8 = inlined_call_operand.vmem [shape: f32[1,128], index: 8, kind: input, shape index: {}]   ;;  %s2817_s9 = inlined_call_operand.hbm [shape: f32[8,128], index: 9, kind: output, shape index: {}]  }
   0x1   :  { %15 = vsyncpa [#allocation8], 0 }
   0x2   :  { %16 = vsyncpa [#allocation11], 0 }
   0x3   :  { %17 = vsyncpa [#allocation6], 0  ;;  %s2334_s30 = smov [#allocation7]   ;;  %s2335_s11 = smov [#allocation10]  }
   0x4   :  { %s35_s10 = sshll.u32 %s2334_s30, 4  ;;  %s61_s12 = sshll.u32 %s2335_s11, 4  ;;  %s36_s10 = int_to_ptr.vmem [resolvable:$true] %s35_s10  ;;  %s2397_s12 = int_to_ptr.vmem [resolvable:$true] %s61_s12 }
   0x5   :  { %s2194_s15 = scalar_lea.hbm %s2809_s1, 1024 }
   0x6   :  { %p2195_p0 = scmp.ne.s32.totalorder %s2809_s1, %s2194_s15  ;;  %p2198_p1 = scmp.lt.u32.totalorder %s2194_s15, %s2809_s1 }
   0x8   :  { %p2200_p2 = pnand %p2198_p1, %p2195_p0 }
   0xa   :  { %2203 = shalt.err (!%p2200_p2)
}
   0xb   :  { %s2204_s20 = scalar_lea.vmem %s36_s10, 1024  ;;  %p2209_p4 = scmp.lt.s32.totalorder %s36_s10, %s36_s10 }
   0xc   :  { %p2205_p3 = scmp.ne.s32.totalorder %s36_s10, %s2204_s20  ;;  %p2210_p5 = scmp.lt.s32.totalorder %s2204_s20, %s2204_s20 }
   0xe   :  { %p2211_p6 = por %p2210_p5, %p2209_p4 }
  0x10   :  { %p2212_p7 = pnand %p2211_p6, %p2205_p3 }
  0x12   :  { %2215 = shalt.err (!%p2212_p7)
}
  0x13   :  { %s2336_s21 = smov 64   ;;  %s2337_s22 = smov 4  }
  0x14   :  { %41 = dma.hbm_to_vmem [thread:$0]  %s2809_s1, 1024, %s36_s10, [#allocation8], %s2336_s21, %s2336_s21, %s2337_s22  }
  0x15   :  { %s2216_s27 = scalar_lea.hbm %s2812_s4, 256 }
  0x16   :  { %p2217_p8 = scmp.ne.s32.totalorder %s2812_s4, %s2216_s27  ;;  %p2220_p9 = scmp.lt.u32.totalorder %s2216_s27, %s2812_s4 }
  0x18   :  { %p2222_p10 = pnand %p2220_p9, %p2217_p8 }
  0x1a   :  { %2225 = shalt.err (!%p2222_p10)
}
  0x1b   :  { %s2226_s13 = scalar_lea.vmem %s2397_s12, 256  ;;  %p2231_p12 = scmp.lt.s32.totalorder %s2397_s12, %s2397_s12 }
  0x1c   :  { %p2227_p11 = scmp.ne.s32.totalorder %s2397_s12, %s2226_s13  ;;  %p2232_p13 = scmp.lt.s32.totalorder %s2226_s13, %s2226_s13 }
  0x1e   :  { %p2233_p0 = por %p2232_p13, %p2231_p12 }
  0x20   :  { %p2234_p1 = pnand %p2233_p0, %p2227_p11 }
  0x22   :  { %2237 = shalt.err (!%p2234_p1)
}
  0x23   :  { %67 = dma.hbm_to_vmem [thread:$0]  %s2812_s4, 256, %s2397_s12, [#allocation11], %s2336_s21, %s2336_s21, %s2337_s22  }
  0x24   :  { %s2338_s14 = smov [#allocation4]   ;;  %s2339_s16 = smov [#allocation9]  }
  0x25   :  { %s23_s15 = sshll.u32 %s2338_s14, 4  ;;  %s47_s17 = sshll.u32 %s2339_s16, 4  ;;  %s24_s15 = int_to_ptr.vmem [resolvable:$true] %s23_s15  ;;  %s2434_s17 = int_to_ptr.vmem [resolvable:$true] %s47_s17 }
  0x26   :  { %s2238_s20 = scalar_lea.hbm %s2808_s0, 512 }
  0x27   :  { %p2239_p2 = scmp.ne.s32.totalorder %s2808_s0, %s2238_s20  ;;  %p2242_p3 = scmp.lt.u32.totalorder %s2238_s20, %s2808_s0 }
  0x29   :  { %p2244_p4 = pnand %p2242_p3, %p2239_p2 }
  0x2b   :  { %2247 = shalt.err (!%p2244_p4)
}
  0x2c   :  { %s2248_s4 = scalar_lea.vmem %s24_s15, 512  ;;  %p2253_p6 = scmp.lt.s32.totalorder %s24_s15, %s24_s15 }
  0x2d   :  { %p2249_p5 = scmp.ne.s32.totalorder %s24_s15, %s2248_s4  ;;  %p2254_p7 = scmp.lt.s32.totalorder %s2248_s4, %s2248_s4 }
  0x2f   :  { %p2255_p8 = por %p2254_p7, %p2253_p6 }
  0x31   :  { %p2256_p9 = pnand %p2255_p8, %p2249_p5 }
  0x33   :  { %2259 = shalt.err (!%p2256_p9)
}
  0x34   :  { %29 = dma.hbm_to_vmem [thread:$0]  %s2808_s0, 512, %s24_s15, [#allocation5], %s2336_s21, %s2336_s21, %s2337_s22  }
  0x35   :  { %s2260_s30 = scalar_lea.hbm %s2810_s2, 256 }
  0x36   :  { %p2261_p10 = scmp.ne.s32.totalorder %s2810_s2, %s2260_s30  ;;  %p2264_p11 = scmp.lt.u32.totalorder %s2260_s30, %s2810_s2 }
  0x38   :  { %p2266_p12 = pnand %p2264_p11, %p2261_p10 }
  0x3a   :  { %2269 = shalt.err (!%p2266_p12)
}
  0x3b   :  { %s2270_s14 = scalar_lea.vmem %s2434_s17, 256  ;;  %p2275_p0 = scmp.lt.s32.totalorder %s2434_s17, %s2434_s17 }
  0x3c   :  { %p2271_p13 = scmp.ne.s32.totalorder %s2434_s17, %s2270_s14  ;;  %p2276_p1 = scmp.lt.s32.totalorder %s2270_s14, %s2270_s14 }
  0x3e   :  { %p2277_p2 = por %p2276_p1, %p2275_p0 }
  0x40   :  { %p2278_p3 = pnand %p2277_p2, %p2271_p13 }
  0x42   :  { %2281 = shalt.err (!%p2278_p3)
}
  0x43   :  { %53 = dma.hbm_to_vmem [thread:$0]  %s2810_s2, 256, %s2434_s17, [#allocation8], %s2336_s21, %s2336_s21, %s2337_s22  }
  0x44   :  { %s2340_s16 = smov [#allocation12]   ;;  %s2282_s23 = scalar_lea.hbm %s2815_s7, 256 }
  0x45   :  { %s77_s18 = sshll.u32 %s2340_s16, 4  ;;  %p2283_p4 = scmp.ne.s32.totalorder %s2815_s7, %s2282_s23  ;;  %s78_s18 = int_to_ptr.vmem [resolvable:$true] %s77_s18 }
  0x46   :  { %p2286_p5 = scmp.lt.u32.totalorder %s2282_s23, %s2815_s7 }
  0x48   :  { %p2288_p6 = pnand %p2286_p5, %p2283_p4 }
  0x4a   :  { %2291 = shalt.err (!%p2288_p6)
}
  0x4b   :  { %s2292_s12 = scalar_lea.vmem %s78_s18, 256  ;;  %p2297_p8 = scmp.lt.s32.totalorder %s78_s18, %s78_s18 }
  0x4c   :  { %p2293_p7 = scmp.ne.s32.totalorder %s78_s18, %s2292_s12  ;;  %p2298_p9 = scmp.lt.s32.totalorder %s2292_s12, %s2292_s12 }
  0x4e   :  { %p2299_p10 = por %p2298_p9, %p2297_p8 }
  0x50   :  { %p2300_p11 = pnand %p2299_p10, %p2293_p7 }
  0x52   :  { %2303 = shalt.err (!%p2300_p11)
}
  0x53   :  { %83 = dma.hbm_to_vmem [thread:$0]  %s2815_s7, 256, %s78_s18, [#allocation11], %s2336_s21, %s2336_s21, %s2337_s22  }
  0x54   :  { %2326 = dma.done.wait [#allocation5], 512  }
  0x55   :  { %2327 = vsyncadd [#allocation5], 4294966784 }
  0x56   :  { %2328 = dma.done.wait [#allocation8], 1280  }
  0x57   :  { %2329 = vsyncadd [#allocation8], 4294966016 }
  0x58   :  { %2330 = dma.done.wait [#allocation11], 512  }
  0x59   :  { %2331 = vsyncadd [#allocation11], 4294966784  ;;  %v2341_v0 = vmov 0.0   ;;  %vm2342_vm0 = vmmov 0   ;;  %v2096_v1 = vld [vmem:[#allocation7] sm:$0xff]   ;;  %v2097_v2 = vld [vmem:[#allocation7 + $0x8] sm:$0xff]   ;;  %v102_v18 = vlaneseq }
  0x5a   :  { %1935 = vmatprep.subr.bf16.mxu1 %v2341_v0  ;;  %1939 = vmatprep.mubr.msk.bf16.mxu1 %vm2342_vm0, %v2341_v0  ;;  %v2098_v3 = vld [vmem:[#allocation7 + $0x10] sm:$0xff]   ;;  %v2103_v4 = vld [vmem:[#allocation9] sm:$0xff]   ;;  %v2099_v5 = vld [vmem:[#allocation7 + $0x18] sm:$0xff]   ;;  %v2343_v10 = vmov 0   ;;  %v2344_v25 = vmov 0.5   ;;  %vm301_vm4 = vcmask 261120  }
  0x5b   :  { %1911 = vmatprep.subr.bf16.mxu0 %v2096_v1  ;;  %1936 = vmatpush3.bf16.msra.mxu1 %v2103_v4  ;;  %v2105_v6 = vld [vmem:[#allocation9 + $0x8] sm:$0xff]   ;;  %v2106_v7 = vld [vmem:[#allocation4] sm:$0xff]   ;;  %v2102_v11 = vld [vmem:[#allocation7 + $0x30] sm:$0xff]   ;;  %v103_v19 = vand.u32 127, %v102_v18  ;;  %s2346_s1 = smov [#allocation13]  }
  0x5c   :  { %1912 = vmatpush3.bf16.msra.mxu0 %v2096_v1  ;;  %1937 = vmatprep.subr.bf16.mxu1 %v2341_v0  ;;  %v2100_v8 = vld [vmem:[#allocation7 + $0x20] sm:$0xff]   ;;  %v2101_v9 = vld [vmem:[#allocation7 + $0x28] sm:$0xff]   ;;  %v2104_v12 = vld [vmem:[#allocation7 + $0x38] sm:$0xff]   ;;  %s1775_s10 = sshll.u32 %s2346_s1, 4  ;;  %s1776_s10 = int_to_ptr.vmem [resolvable:$true] %s1775_s10 }
  0x5d   :  { %1913 = vmatprep.subr.bf16.mxu0 %v2097_v2  ;;  %1927 = vmatprep.mubr.bf16.mxu0 %v2106_v7  ;;  %v2107_v13 = vld [vmem:[#allocation4 + $0x8] sm:$0xff]   ;;  %vm104_vm1 = vcmp.ge.s32.totalorder %v103_v19, 64  ;;  %vm105_vm2 = vcmp.lt.s32.totalorder %v103_v19, 96  ;;  %v2498_v20 = vld [vmem:[%s2811_s3] ss:$0 sm:$0xff]  ;;  %s2345_s3 = smov 32   ;;  %p2309_p13 = scmp.lt.s32.totalorder %s1776_s10, %s1776_s10 }
  0x5e   :  { %vm106_vm3 = vmand %vm104_vm1, %vm105_vm2  ;;  %v2108_v38 = vld [vmem:[#allocation9] sm:$0xff]   ;;  %v2109_v39 = vld [vmem:[#allocation9 + $0x8] sm:$0xff]  }
  0x5f   :  { %1938 = vmatpush3.bf16.msra.mxu1 %v2105_v6  ;;  %v2505_v26 = vsel %vm106_vm3, 1.0, %v2344_v25  ;;  %v2110_v60 = vld [vmem:[#allocation9] sm:$0xff]   ;;  %v2111_v61 = vld [vmem:[#allocation9 + $0x8] sm:$0xff]  }
  0x60   :  { %1914 = vmatpush3.bf16.msra.mxu0 %v2097_v2  ;;  %1943 = vmatprep.subr.bf16.mxu1 %v2341_v0 }
  0x61   :  { %1915 = vmatprep.subr.bf16.mxu0 %v2098_v3 }
  0x62   :  { %1940 = vmatmul.mubr.bf16.vlgmr.msra.gmra.mrb[0].mxu1 %v2343_v10 }
  0x63   :  { %1947 = vmatprep.mubr.msk.bf16.mxu1 %vm2342_vm0, %v2341_v0  ;;  %1944 = vmatpush3.bf16.msra.mxu1 %v2108_v38 }
  0x64   :  { %1916 = vmatpush3.bf16.msra.mxu0 %v2098_v3  ;;  %1945 = vmatprep.subr.bf16.mxu1 %v2341_v0 }
  0x65   :  { %1917 = vmatprep.subr.bf16.mxu0 %v2099_v5 }
  0x67   :  { %1946 = vmatpush3.bf16.msra.mxu1 %v2109_v39 }
  0x68   :  { %1918 = vmatpush3.bf16.msra.mxu0 %v2099_v5  ;;  %1951 = vmatprep.subr.bf16.mxu1 %v2341_v0 }
  0x69   :  { %1919 = vmatprep.subr.bf16.mxu0 %v2100_v8 }
  0x6c   :  { %1920 = vmatpush3.bf16.msra.mxu0 %v2100_v8 }
  0x6d   :  { %1921 = vmatprep.subr.bf16.mxu0 %v2101_v9 }
  0x70   :  { %1922 = vmatpush3.bf16.msra.mxu0 %v2101_v9 }
  0x71   :  { %1923 = vmatprep.subr.bf16.mxu0 %v2102_v11 }
  0x74   :  { %1924 = vmatpush3.bf16.msra.mxu0 %v2102_v11 }
  0x75   :  { %1925 = vmatprep.subr.bf16.mxu0 %v2104_v12 }
  0x78   :  { %1926 = vmatpush3.bf16.msra.mxu0 %v2104_v12 }
  0x79   :  { %1975 = vmatprep.subr.bf16.mxu0 %v2341_v0 }
  0x7b   :  { %1928 = vmatmul.mubr.bf16.vlgmr.msra.gmra.mrb[0].mxu0 %v2107_v13 }
 0x135   :  { %v339_v14 = vpop.f32.mrb[0].mxu1 }
 0x136   :  { %v1941_v15 = vpop.f32.mrb[1].mxu1 }
 0x137   :  { %v342_v16 = vpop.f32.mrb[2].mxu1 }
 0x138   :  { %v1942_v17 = vpop.f32.mrb[3].mxu1 }
 0x14e   :  { %v2500_v21 = vpop.f32.mrb[0].mxu0 }
 0x14f   :  { %v245_v22 = vpop.f32.mrb[1].mxu0  ;;  %v254_v4 = vadd.f32 %v2500_v21, %v2498_v20  ;;  %v2112_v21 = vld [vmem:[#allocation9] sm:$0xff]  }
 0x150   :  { %v246_v23 = vadd.f32 %v2498_v20, %v245_v22  ;;  %v2503_v24 = vpop.f32.mrb[2].mxu0  ;;  %v2113_v22 = vld [vmem:[#allocation9 + $0x8] sm:$0xff]  }
 0x151   :  { %v248_v27 = vpop.f32.mrb[3].mxu0 }
 0x152   :  { %v345_v28 = vadd.f32 %v339_v14, %v246_v23  ;;  %v249_v45 = vadd.f32 %v2498_v20, %v248_v27 }
 0x154   :  { %v346_v29 = vmul.f32 %v345_v28, %v2505_v26 }
 0x156   :  { %2130 = vtanh.f32 %v346_v29 }
 0x160   :  { %v2131_v30 = vpop.eup %2130 }
 0x161   :  { %352 = vrot.lane.b32.xlu0 %v2131_v30, %s2336_s21  ;;  %v348_v31 = vadd.f32 1.0, %v2131_v30  ;;  %v257_v30 = vadd.f32 %v2503_v24, %v2498_v20 }
 0x163   :  { %v349_v32 = vmul.f32 0.5, %v348_v31 }
 0x165   :  { %v350_v35 = vmul.f32 0.0, %v349_v32 }
 0x1d3   :  { %v353_v33 = vpop.permute.xlu0 %352 }
 0x1d4   :  { %v355_v34 = vmul.f32 %v353_v33, %v349_v32 }
 0x1d6   :  { %357 = vrot.lane.b32.xlu0 %v355_v34, %s2345_s3 }
 0x248   :  { %v358_v36 = vpop.permute.xlu0 %357 }
 0x249   :  { %v360_v37 = vadd.f32 %v358_v36, %v350_v35 }
 0x24b   :  { %2132 = vtanh.f32 %v360_v37 }
 0x255   :  { %v2133_v40 = vpop.eup %2132 }
 0x256   :  { %363 = vrot.lane.b32.xlu1 %v2133_v40, %s2336_s21 }
 0x2c8   :  { %v364_v41 = vpop.permute.xlu1 %363 }
 0x2c9   :  { %v2513_v42 = vmul.f32 %v364_v41, %v349_v32 }
 0x2cb   :  { %v373_v43 = vpack.c.bf16 %v2513_v42, %v2513_v42 }
 0x2cd   :  { %379 = vrot.lane.b32.xlu1 %v373_v43, %s2345_s3 }
 0x33f   :  { %v380_v44 = vpop.permute.xlu1 %379 }
 0x340   :  { %1948 = vmatmul.mubr.msk.bf16.vlgmr.msra.gmra.mrb[4].mxu1 %vm301_vm4, %v380_v44 }
 0x341   :  { %1955 = vmatprep.mubr.msk.bf16.mxu1 %vm2342_vm0, %v2341_v0  ;;  %1952 = vmatpush3.bf16.msra.mxu1 %v2110_v60 }
 0x342   :  { %1953 = vmatprep.subr.bf16.mxu1 %v2341_v0 }
 0x345   :  { %1954 = vmatpush3.bf16.msra.mxu1 %v2111_v61 }
 0x346   :  { %1959 = vmatprep.subr.bf16.mxu1 %v2341_v0 }
 0x413   :  { %v430_v46 = vpop.f32.mrb[4].mxu1 }
 0x414   :  { %v436_v47 = vadd.f32 %v430_v46, %v249_v45  ;;  %v1949_v48 = vpop.f32.mrb[5].mxu1  ;;  %v2114_v45 = vld [vmem:[#allocation9] sm:$0xff]   ;;  %v2115_v46 = vld [vmem:[#allocation4 + $0x10] sm:$0xff]  }
 0x415   :  { %v433_v49 = vpop.f32.mrb[6].mxu1  ;;  %1931 = vmatprep.mubr.bf16.mxu0 %v2115_v46  ;;  %v2117_v48 = vld [vmem:[#allocation9 + $0x8] sm:$0xff]  }
 0x416   :  { %v437_v50 = vmul.f32 %v436_v47, %v2505_v26  ;;  %v1950_v51 = vpop.f32.mrb[7].mxu1  ;;  %v2116_v47 = vld [vmem:[#allocation4 + $0x18] sm:$0xff]  }
 0x417   :  { %1932 = vmatmul.mubr.bf16.gmra.mrb[4].mxu0 %v2116_v47 }
 0x418   :  { %2134 = vtanh.f32 %v437_v50  ;;  %1979 = vmatprep.mubr.msk.bf16.mxu0 %vm2342_vm0, %v2341_v0 }
 0x422   :  { %v2135_v52 = vpop.eup %2134 }
 0x423   :  { %443 = vrot.lane.b32.xlu0 %v2135_v52, %s2336_s21  ;;  %v439_v53 = vadd.f32 1.0, %v2135_v52 }
 0x425   :  { %v440_v54 = vmul.f32 0.5, %v439_v53 }
 0x427   :  { %v441_v57 = vmul.f32 %v440_v54, %v360_v37 }
 0x495   :  { %v444_v55 = vpop.permute.xlu0 %443 }
 0x496   :  { %v446_v56 = vmul.f32 %v444_v55, %v440_v54 }
 0x498   :  { %448 = vrot.lane.b32.xlu1 %v446_v56, %s2345_s3 }
 0x4ea   :  { %v2567_v53 = vpop.f32.mrb[4].mxu0 }
 0x50a   :  { %v449_v58 = vpop.permute.xlu1 %448 }
 0x50b   :  { %v451_v59 = vadd.f32 %v449_v58, %v441_v57 }
 0x50d   :  { %2136 = vtanh.f32 %v451_v59 }
 0x517   :  { %v2137_v62 = vpop.eup %2136 }
 0x518   :  { %454 = vrot.lane.b32.xlu0 %v2137_v62, %s2336_s21 }
 0x58a   :  { %v455_v63 = vpop.permute.xlu0 %454 }
 0x58b   :  { %v2528_v1 = vmul.f32 %v455_v63, %v440_v54  ;;  %v261_v54 = vpop.f32.mrb[5].mxu0 }
 0x58c   :  { %v2569_v55 = vpop.f32.mrb[6].mxu0  ;;  %v262_v58 = vadd.f32 %v2498_v20, %v261_v54 }
 0x58d   :  { %v464_v2 = vpack.c.bf16 %v2528_v1, %v2528_v1  ;;  %v264_v56 = vpop.f32.mrb[7].mxu0 }
 0x58f   :  { %470 = vrot.lane.b32.xlu1 %v464_v2, %s2345_s3 }
 0x601   :  { %v471_v3 = vpop.permute.xlu1 %470 }
 0x602   :  { %1956 = vmatmul.mubr.msk.bf16.vlgmr.msra.gmra.mrb[8].mxu1 %vm301_vm4, %v471_v3 }
 0x603   :  { %1963 = vmatprep.mubr.msk.bf16.mxu1 %vm2342_vm0, %v2341_v0  ;;  %1960 = vmatpush3.bf16.msra.mxu1 %v2112_v21 }
 0x604   :  { %1961 = vmatprep.subr.bf16.mxu1 %v2341_v0 }
 0x607   :  { %1962 = vmatpush3.bf16.msra.mxu1 %v2113_v22 }
 0x608   :  { %1967 = vmatprep.subr.bf16.mxu1 %v2341_v0 }
 0x6d5   :  { %v521_v5 = vpop.f32.mrb[8].mxu1 }
 0x6d6   :  { %v527_v6 = vadd.f32 %v521_v5, %v254_v4  ;;  %v1957_v7 = vpop.f32.mrb[9].mxu1 }
 0x6d7   :  { %v524_v8 = vpop.f32.mrb[10].mxu1 }
 0x6d8   :  { %v528_v9 = vmul.f32 %v527_v6, %v2505_v26  ;;  %v1958_v11 = vpop.f32.mrb[11].mxu1 }
 0x6da   :  { %2138 = vtanh.f32 %v528_v9 }
 0x6e4   :  { %v2139_v12 = vpop.eup %2138 }
 0x6e5   :  { %534 = vrot.lane.b32.xlu0 %v2139_v12, %s2336_s21  ;;  %v530_v13 = vadd.f32 1.0, %v2139_v12  ;;  %v2118_v12 = vld [vmem:[#allocation9] sm:$0xff]  }
 0x6e6   :  { %1976 = vmatpush3.bf16.msra.mxu0 %v2118_v12 }
 0x6e7   :  { %v531_v14 = vmul.f32 0.5, %v530_v13  ;;  %v2119_v13 = vld [vmem:[#allocation9 + $0x8] sm:$0xff]   ;;  %1977 = vmatprep.subr.bf16.mxu0 %v2341_v0 }
 0x6e9   :  { %v532_v17 = vmul.f32 %v531_v14, %v451_v59 }
 0x6ea   :  { %1978 = vmatpush3.bf16.msra.mxu0 %v2119_v13 }
 0x6eb   :  { %1991 = vmatprep.subr.bf16.mxu0 %v2341_v0 }
 0x757   :  { %v535_v15 = vpop.permute.xlu0 %534 }
 0x758   :  { %v537_v16 = vmul.f32 %v535_v15, %v531_v14 }
 0x75a   :  { %539 = vrot.lane.b32.xlu1 %v537_v16, %s2345_s3 }
 0x7cc   :  { %v540_v18 = vpop.permute.xlu1 %539 }
 0x7cd   :  { %v542_v19 = vadd.f32 %v540_v18, %v532_v17 }
 0x7cf   :  { %2140 = vtanh.f32 %v542_v19 }
 0x7d9   :  { %v2141_v23 = vpop.eup %2140 }
 0x7da   :  { %545 = vrot.lane.b32.xlu0 %v2141_v23, %s2336_s21 }
 0x84c   :  { %v546_v25 = vpop.permute.xlu0 %545 }
 0x84d   :  { %v2544_v27 = vmul.f32 %v546_v25, %v531_v14 }
 0x84f   :  { %v555_v28 = vpack.c.bf16 %v2544_v27, %v2544_v27 }
 0x851   :  { %561 = vrot.lane.b32.xlu1 %v555_v28, %s2345_s3 }
 0x8c3   :  { %v562_v29 = vpop.permute.xlu1 %561 }
 0x8c4   :  { %1964 = vmatmul.mubr.msk.bf16.vlgmr.msra.gmra.mrb[12].mxu1 %vm301_vm4, %v562_v29 }
 0x8c5   :  { %1971 = vmatprep.mubr.msk.bf16.mxu1 %vm2342_vm0, %v2341_v0  ;;  %1968 = vmatpush3.bf16.msra.mxu1 %v2114_v45  ;;  %v270_v45 = vadd.f32 %v2567_v53, %v2498_v20 }
 0x8c6   :  { %1969 = vmatprep.subr.bf16.mxu1 %v2341_v0 }
 0x8c9   :  { %1970 = vmatpush3.bf16.msra.mxu1 %v2117_v48 }
 0x8ca   :  { %1983 = vmatprep.subr.bf16.mxu1 %v2341_v0 }
 0x997   :  { %v612_v31 = vpop.f32.mrb[12].mxu1 }
 0x998   :  { %v618_v32 = vadd.f32 %v612_v31, %v257_v30  ;;  %v1965_v33 = vpop.f32.mrb[13].mxu1 }
 0x999   :  { %v615_v34 = vpop.f32.mrb[14].mxu1 }
 0x99a   :  { %v619_v35 = vmul.f32 %v618_v32, %v2505_v26  ;;  %v1966_v36 = vpop.f32.mrb[15].mxu1 }
 0x99c   :  { %2142 = vtanh.f32 %v619_v35 }
 0x9a6   :  { %v2143_v37 = vpop.eup %2142 }
 0x9a7   :  { %625 = vrot.lane.b32.xlu0 %v2143_v37, %s2336_s21  ;;  %v621_v38 = vadd.f32 1.0, %v2143_v37 }
 0x9a9   :  { %v622_v39 = vmul.f32 0.5, %v621_v38  ;;  %v2120_v38 = vld [vmem:[#allocation9] sm:$0xff]  }
 0x9ab   :  { %v623_v43 = vmul.f32 %v622_v39, %v542_v19  ;;  %v265_v19 = vadd.f32 %v2498_v20, %v264_v56 }
 0xa19   :  { %v626_v40 = vpop.permute.xlu0 %625 }
 0xa1a   :  { %v628_v41 = vmul.f32 %v626_v40, %v622_v39 }
 0xa1c   :  { %630 = vrot.lane.b32.xlu1 %v628_v41, %s2345_s3 }
 0xa8e   :  { %v631_v44 = vpop.permute.xlu1 %630 }
 0xa8f   :  { %v633_v24 = vadd.f32 %v631_v44, %v623_v43 }
 0xa91   :  { %2144 = vtanh.f32 %v633_v24 }
 0xa9b   :  { %v2145_v49 = vpop.eup %2144 }
 0xa9c   :  { %636 = vrot.lane.b32.xlu0 %v2145_v49, %s2336_s21 }
 0xb0e   :  { %v637_v50 = vpop.permute.xlu0 %636 }
 0xb0f   :  { %v2562_v51 = vmul.f32 %v637_v50, %v622_v39  ;;  %v2121_v39 = vld [vmem:[#allocation9 + $0x8] sm:$0xff]  }
 0xb11   :  { %v646_v52 = vpack.c.bf16 %v2562_v51, %v2562_v51 }
 0xb13   :  { %652 = vrot.lane.b32.xlu1 %v646_v52, %s2345_s3 }
 0xb85   :  { %v653_v57 = vpop.permute.xlu1 %652 }
 0xb86   :  { %1972 = vmatmul.mubr.msk.bf16.vlgmr.msra.gmra.mrb[16].mxu1 %vm301_vm4, %v653_v57 }
 0xb87   :  { %1987 = vmatprep.mubr.msk.bf16.mxu1 %vm2342_vm0, %v2341_v0  ;;  %1984 = vmatpush3.bf16.msra.mxu1 %v2120_v38 }
 0xb88   :  { %1985 = vmatprep.subr.bf16.mxu1 %v2341_v0 }
 0xb8b   :  { %1986 = vmatpush3.bf16.msra.mxu1 %v2121_v39 }
 0xc59   :  { %v703_v59 = vpop.f32.mrb[16].mxu1 }
 0xc5a   :  { %v709_v60 = vadd.f32 %v703_v59, %v262_v58  ;;  %v1973_v61 = vpop.f32.mrb[17].mxu1 }
 0xc5b   :  { %v706_v62 = vpop.f32.mrb[18].mxu1 }
 0xc5c   :  { %v710_v63 = vmul.f32 %v709_v60, %v2505_v26  ;;  %v1974_v2 = vpop.f32.mrb[19].mxu1 }
 0xc5d   :  { %v2122_v2 = vld [vmem:[#allocation10] sm:$0xff]  }
 0xc5e   :  { %2146 = vtanh.f32 %v710_v63  ;;  %1999 = vmatprep.subr.bf16.mxu1 %v2122_v2 }
 0xc68   :  { %v2147_v3 = vpop.eup %2146 }
 0xc69   :  { %716 = vrot.lane.b32.xlu0 %v2147_v3, %s2336_s21  ;;  %v712_v4 = vadd.f32 1.0, %v2147_v3  ;;  %v2123_v3 = vld [vmem:[#allocation10 + $0x8] sm:$0xff]  }
 0xc6b   :  { %v713_v5 = vmul.f32 0.5, %v712_v4  ;;  %v2125_v4 = vld [vmem:[#allocation9 + $0x8] sm:$0xff]  }
 0xc6d   :  { %v714_v8 = vmul.f32 %v713_v5, %v633_v24 }
 0xcdb   :  { %v717_v6 = vpop.permute.xlu0 %716 }
 0xcdc   :  { %v719_v7 = vmul.f32 %v717_v6, %v713_v5 }
 0xcde   :  { %721 = vrot.lane.b32.xlu1 %v719_v7, %s2345_s3 }
 0xd50   :  { %v722_v9 = vpop.permute.xlu1 %721 }
 0xd51   :  { %v724_v11 = vadd.f32 %v722_v9, %v714_v8 }
 0xd53   :  { %2148 = vtanh.f32 %v724_v11 }
 0xd5d   :  { %v2149_v14 = vpop.eup %2148 }
 0xd5e   :  { %727 = vrot.lane.b32.xlu0 %v2149_v14, %s2336_s21 }
 0xdd0   :  { %v728_v15 = vpop.permute.xlu0 %727 }
 0xdd1   :  { %v2581_v16 = vmul.f32 %v728_v15, %v713_v5  ;;  %v2634_v15 = vld [vmem:[%s2813_s5] sm:$0xff]  }
 0xdd3   :  { %v737_v17 = vpack.c.bf16 %v2581_v16, %v2581_v16 }
 0xdd5   :  { %743 = vrot.lane.b32.xlu1 %v737_v17, %s2345_s3  ;;  %v2642_v17 = vld [vmem:[%s2813_s5 + $0x8] sm:$0xff]  }
 0xe47   :  { %v744_v18 = vpop.permute.xlu1 %743 }
 0xe48   :  { %1980 = vmatmul.mubr.msk.bf16.vlgmr.msra.gmra.mrb[8].mxu0 %vm301_vm4, %v744_v18 }
 0xe49   :  { %1995 = vmatprep.mubr.msk.bf16.mxu0 %vm2342_vm0, %v2341_v0 }
 0xf1b   :  { %v794_v21 = vpop.f32.mrb[8].mxu0 }
 0xf1c   :  { %v800_v22 = vadd.f32 %v794_v21, %v265_v19  ;;  %v1981_v23 = vpop.f32.mrb[9].mxu0 }
 0xf1d   :  { %v797_v25 = vpop.f32.mrb[10].mxu0 }
 0xf1e   :  { %v801_v28 = vmul.f32 %v800_v22, %v2505_v26  ;;  %v1982_v29 = vpop.f32.mrb[11].mxu0 }
 0xf20   :  { %2150 = vtanh.f32 %v801_v28 }
 0xf2a   :  { %v2151_v30 = vpop.eup %2150 }
 0xf2b   :  { %807 = vrot.lane.b32.xlu0 %v2151_v30, %s2336_s21  ;;  %v803_v31 = vadd.f32 1.0, %v2151_v30 }
 0xf2d   :  { %v804_v32 = vmul.f32 0.5, %v803_v31 }
 0xf2f   :  { %v805_v35 = vmul.f32 %v804_v32, %v724_v11 }
 0xf9d   :  { %v808_v33 = vpop.permute.xlu0 %807 }
 0xf9e   :  { %v810_v34 = vmul.f32 %v808_v33, %v804_v32 }
 0xfa0   :  { %812 = vrot.lane.b32.xlu1 %v810_v34, %s2345_s3 }
0x1012   :  { %v813_v36 = vpop.permute.xlu1 %812 }
0x1013   :  { %v815_v37 = vadd.f32 %v813_v36, %v805_v35 }
0x1015   :  { %2152 = vtanh.f32 %v815_v37 }
0x101f   :  { %v2153_v40 = vpop.eup %2152 }
0x1020   :  { %818 = vrot.lane.b32.xlu0 %v2153_v40, %s2336_s21 }
0x1092   :  { %v819_v41 = vpop.permute.xlu0 %818 }
0x1093   :  { %v2595_v43 = vmul.f32 %v819_v41, %v804_v32  ;;  %v2669_v32 = vld [vmem:[%s2814_s6] ss:$0 sm:$0xff] }
0x1095   :  { %v828_v44 = vpack.c.bf16 %v2595_v43, %v2595_v43 }
0x1097   :  { %834 = vrot.lane.b32.xlu1 %v828_v44, %s2345_s3 }
0x1109   :  { %v835_v24 = vpop.permute.xlu1 %834 }
0x110a   :  { %1988 = vmatmul.mubr.msk.bf16.vlgmr.msra.gmra.mrb[20].mxu1 %vm301_vm4, %v835_v24 }
0x110b   :  { %2000 = vmatpush3.bf16.msra.mxu1 %v2122_v2 }
0x110c   :  { %2001 = vmatprep.subr.bf16.mxu1 %v2123_v3 }
0x110f   :  { %2002 = vmatpush3.bf16.msra.mxu1 %v2123_v3 }
0x1110   :  { %2027 = vmatprep.subr.bf16.mxu1 %v2341_v0 }
0x11dd   :  { %v885_v46 = vpop.f32.mrb[20].mxu1 }
0x11de   :  { %v891_v47 = vadd.f32 %v885_v46, %v270_v45  ;;  %v1989_v48 = vpop.f32.mrb[21].mxu1 }
0x11df   :  { %v888_v49 = vpop.f32.mrb[22].mxu1 }
0x11e0   :  { %v892_v50 = vmul.f32 %v891_v47, %v2505_v26  ;;  %v1990_v52 = vpop.f32.mrb[23].mxu1 }
0x11e2   :  { %2154 = vtanh.f32 %v892_v50 }
0x11ec   :  { %v2155_v54 = vpop.eup %2154 }
0x11ed   :  { %898 = vrot.lane.b32.xlu0 %v2155_v54, %s2336_s21  ;;  %v894_v56 = vadd.f32 1.0, %v2155_v54 }
0x11ef   :  { %v895_v57 = vmul.f32 0.5, %v894_v56 }
0x11f1   :  { %v896_v53 = vmul.f32 %v895_v57, %v815_v37 }
0x125f   :  { %v899_v58 = vpop.permute.xlu0 %898 }
0x1260   :  { %v901_v59 = vmul.f32 %v899_v58, %v895_v57 }
0x1262   :  { %903 = vrot.lane.b32.xlu1 %v901_v59, %s2345_s3 }
0x1266   :  { %368 = vrot.lane.b32.xlu1 %v2513_v42, %s2345_s3 }
0x126a   :  { %550 = vrot.lane.b32.xlu1 %v2544_v27, %s2345_s3  ;;  %v2124_v27 = vld [vmem:[#allocation9] sm:$0xff]  }
0x126b   :  { %1992 = vmatpush3.bf16.msra.mxu0 %v2124_v27 }
0x126c   :  { %1993 = vmatprep.subr.bf16.mxu0 %v2341_v0 }
0x126f   :  { %1994 = vmatpush3.bf16.msra.mxu0 %v2125_v4 }
0x1270   :  { %2011 = vmatprep.subr.bf16.mxu0 %v2341_v0 }
0x12d4   :  { %v904_v60 = vpop.permute.xlu1 %903 }
0x12d5   :  { %v2610_v61 = vadd.f32 %v904_v60, %v896_v53 }
0x12d7   :  { %2156 = vtanh.f32 %v2610_v61 }
0x12d8   :  { %v369_v62 = vpop.permute.xlu1 %368 }
0x12d9   :  { %371 = vst.msk [vmem:[#allocation2] sm:$0xff] %vm301_vm4, %v369_v62 }
0x12dc   :  { %v551_v63 = vpop.permute.xlu1 %550 }
0x12dd   :  { %553 = vst.msk [vmem:[#allocation2 + $0x10] sm:$0xff] %vm301_vm4, %v551_v63 }
0x12e1   :  { %v2157_v42 = vpop.eup %2156 }
0x12e2   :  { %909 = vrot.lane.b32.xlu0 %v2157_v42, %s2336_s21 }
0x12e4   :  { %v1011_v12 = vld [vmem:[#allocation2 + $0x10] sm:$0xff] }
0x12e6   :  { %459 = vrot.lane.b32.xlu0 %v2528_v1, %s2345_s3 }
0x12ea   :  { %641 = vrot.lane.b32.xlu0 %v2562_v51, %s2345_s3  ;;  %v1009_v51 = vld [vmem:[#allocation2] sm:$0xff] }
0x1354   :  { %v910_v5 = vpop.permute.xlu0 %909 }
0x1355   :  { %v2623_v6 = vmul.f32 %v910_v5, %v895_v57 }
0x1357   :  { %v919_v7 = vpack.c.bf16 %v2623_v6, %v2623_v6 }
0x1358   :  { %v460_v8 = vpop.permute.xlu0 %459 }
0x1359   :  { %462 = vst.msk [vmem:[#allocation2 + $0x8] sm:$0xff] %vm301_vm4, %v460_v8  ;;  %925 = vrot.lane.b32.xlu1 %v919_v7, %s2345_s3 }
0x135c   :  { %v642_v1 = vpop.permute.xlu0 %641 }
0x135d   :  { %644 = vst.msk [vmem:[#allocation2 + $0x18] sm:$0xff] %vm301_vm4, %v642_v1 }
0x1360   :  { %v1010_v9 = vld [vmem:[#allocation2 + $0x8] sm:$0xff] }
0x1361   :  { %v1017_v11 = vpack.c.bf16 %v1010_v9, %v1009_v51 }
0x1363   :  { %2003 = vmatprep.mubr.msk.bf16.mxu1 %vm301_vm4, %v1017_v11 }
0x1364   :  { %v1012_v13 = vld [vmem:[#allocation2 + $0x18] sm:$0xff] }
0x1365   :  { %v1018_v14 = vpack.c.bf16 %v1012_v13, %v1011_v12 }
0x1367   :  { %2004 = vmatmul.mubr.msk.bf16.vlgmr.msra.gmra.mrb[24].mxu1 %vm301_vm4, %v1018_v14 }
0x1368   :  { %2028 = vmatpush3.bf16.msra.mxu1 %v2634_v15 }
0x1369   :  { %2029 = vmatprep.subr.bf16.mxu1 %v2341_v0 }
0x136c   :  { %2030 = vmatpush3.bf16.msra.mxu1 %v2642_v17 }
0x136d   :  { %2043 = vmatprep.subr.bf16.mxu1 %v2341_v0 }
0x13cb   :  { %v926_v18 = vpop.permute.xlu1 %925 }
0x13cc   :  { %1996 = vmatmul.mubr.msk.bf16.vlgmr.msra.gmra.mrb[12].mxu0 %vm301_vm4, %v926_v18 }
0x13cd   :  { %2012 = vmatpush3.bf16.msra.mxu0 %v2634_v15  ;;  %2015 = vmatprep.mubr.msk.bf16.mxu0 %vm2342_vm0, %v2341_v0 }
0x13ce   :  { %2013 = vmatprep.subr.bf16.mxu0 %v2341_v0 }
0x13d1   :  { %2014 = vmatpush3.bf16.msra.mxu0 %v2642_v17 }
0x13d2   :  { %2019 = vmatprep.subr.bf16.mxu0 %v2341_v0 }
0x13d4   :  { %2016 = vmatmul.mubr.bf16.vlgmr.msra.gmra.mrb[16].mxu0 %v2343_v10  ;;  %v273_v10 = vadd.f32 %v2569_v55, %v2498_v20 }
0x13d5   :  { %2020 = vmatpush3.bf16.msra.mxu0 %v2634_v15  ;;  %2023 = vmatprep.mubr.msk.bf16.mxu0 %vm2342_vm0, %v2341_v0 }
0x13d6   :  { %2021 = vmatprep.subr.bf16.mxu0 %v2341_v0 }
0x13d9   :  { %2022 = vmatpush3.bf16.msra.mxu0 %v2642_v17 }
0x13da   :  { %2035 = vmatprep.subr.bf16.mxu0 %v2341_v0 }
0x143a   :  { %v2660_v19 = vpop.f32.mrb[24].mxu1 }
0x143b   :  { %v1090_v21 = vpop.f32.mrb[25].mxu1 }
0x143c   :  { %v2662_v22 = vpop.f32.mrb[26].mxu1  ;;  %v1091_v33 = vadd.f32 %v2669_v32, %v1090_v21 }
0x143d   :  { %v1093_v23 = vpop.f32.mrb[27].mxu1 }
0x143e   :  { %v1094_v27 = vadd.f32 %v2669_v32, %v1093_v23 }
0x149f   :  { %v976_v25 = vpop.f32.mrb[12].mxu0 }
0x14a0   :  { %v982_v28 = vadd.f32 %v976_v25, %v273_v10  ;;  %v1997_v29 = vpop.f32.mrb[13].mxu0 }
0x14a1   :  { %v979_v30 = vpop.f32.mrb[14].mxu0 }
0x14a2   :  { %v1998_v31 = vpop.f32.mrb[15].mxu0  ;;  %v983_v47 = vmul.f32 %v982_v28, %v2505_v26 }
0x14a7   :  { %v1180_v34 = vpop.f32.mrb[16].mxu0 }
0x14a8   :  { %v1186_v35 = vadd.f32 %v1180_v34, %v1091_v33  ;;  %v2017_v36 = vpop.f32.mrb[17].mxu0 }
0x14a9   :  { %v1183_v37 = vpop.f32.mrb[18].mxu0 }
0x14aa   :  { %v1187_v38 = vmul.f32 %v1186_v35, %v2505_v26  ;;  %v2018_v39 = vpop.f32.mrb[19].mxu0 }
0x14ac   :  { %2158 = vtanh.f32 %v1187_v38 }
0x14b6   :  { %v2159_v20 = vpop.eup %2158 }
0x14b7   :  { %1193 = vrot.lane.b32.xlu0 %v2159_v20, %s2336_s21  ;;  %v1189_v55 = vadd.f32 1.0, %v2159_v20 }
0x14b9   :  { %v1190_v40 = vmul.f32 0.5, %v1189_v55 }
0x14bb   :  { %v1191_v24 = vmul.f32 0.0, %v1190_v40 }
0x1529   :  { %v1194_v41 = vpop.permute.xlu0 %1193 }
0x152a   :  { %v1196_v44 = vmul.f32 %v1194_v41, %v1190_v40 }
0x152c   :  { %1198 = vrot.lane.b32.xlu1 %v1196_v44, %s2345_s3 }
0x159e   :  { %v1199_v45 = vpop.permute.xlu1 %1198 }
0x159f   :  { %v1201_v46 = vadd.f32 %v1199_v45, %v1191_v24 }
0x15a1   :  { %2160 = vtanh.f32 %v1201_v46 }
0x15a2   :  { %2162 = vtanh.f32 %v983_v47 }
0x15ab   :  { %v2161_v48 = vpop.eup %2160 }
0x15ac   :  { %1204 = vrot.lane.b32.xlu0 %v2161_v48, %s2336_s21  ;;  %v2163_v49 = vpop.eup %2162 }
0x15ad   :  { %v985_v50 = vadd.f32 1.0, %v2163_v49 }
0x15af   :  { %v986_v57 = vmul.f32 0.5, %v985_v50 }
0x15b0   :  { %989 = vrot.lane.b32.xlu0 %v2163_v49, %s2336_s21 }
0x15b1   :  { %v987_v60 = vmul.f32 %v986_v57, %v2610_v61 }
0x161e   :  { %v1205_v52 = vpop.permute.xlu0 %1204 }
0x161f   :  { %v1207_v54 = vmul.f32 %v1205_v52, %v1190_v40  ;;  %v1099_v40 = vadd.f32 %v2660_v19, %v2669_v32 }
0x1621   :  { %v1209_v56 = vpack.c.bf16 %v1207_v54, %v1207_v54 }
0x1622   :  { %v990_v58 = vpop.permute.xlu0 %989 }
0x1623   :  { %v992_v59 = vmul.f32 %v990_v58, %v986_v57  ;;  %1211 = vrot.lane.b32.xlu1 %v1209_v56, %s2345_s3 }
0x1625   :  { %994 = vrot.lane.b32.xlu0 %v992_v59, %s2345_s3 }
0x1695   :  { %v1212_v53 = vpop.permute.xlu1 %1211 }
0x1696   :  { %2024 = vmatmul.mubr.msk.bf16.vlgmr.msra.gmra.mrb[20].mxu0 %vm301_vm4, %v1212_v53 }
0x1697   :  { %v995_v62 = vpop.permute.xlu0 %994  ;;  %2036 = vmatpush3.bf16.msra.mxu0 %v2634_v15  ;;  %2039 = vmatprep.mubr.msk.bf16.mxu0 %vm2342_vm0, %v2341_v0 }
0x1698   :  { %v997_v63 = vadd.f32 %v995_v62, %v987_v60  ;;  %2037 = vmatprep.subr.bf16.mxu0 %v2341_v0 }
0x169a   :  { %2164 = vtanh.f32 %v997_v63  ;;  %v1102_v63 = vadd.f32 %v2662_v22, %v2669_v32 }
0x169b   :  { %2038 = vmatpush3.bf16.msra.mxu0 %v2642_v17 }
0x169c   :  { %2051 = vmatprep.subr.bf16.mxu0 %v2341_v0 }
0x16a4   :  { %v2165_v2 = vpop.eup %2164 }
0x16a5   :  { %1000 = vrot.lane.b32.xlu0 %v2165_v2, %s2336_s21 }
0x16a9   :  { %732 = vrot.lane.b32.xlu0 %v2581_v16, %s2345_s3 }
0x16ad   :  { %914 = vrot.lane.b32.xlu0 %v2623_v6, %s2345_s3 }
0x1717   :  { %v1001_v61 = vpop.permute.xlu0 %1000 }
0x1718   :  { %v1003_v23 = vmul.f32 %v1001_v61, %v986_v57 }
0x171b   :  { %v733_v3 = vpop.permute.xlu0 %732 }
0x171c   :  { %735 = vst.msk [vmem:[#allocation2 + $0x20] sm:$0xff] %vm301_vm4, %v733_v3 }
0x171f   :  { %v915_v42 = vpop.permute.xlu0 %914 }
0x1720   :  { %917 = vst.msk [vmem:[#allocation2 + $0x30] sm:$0xff] %vm301_vm4, %v915_v42 }
0x1723   :  { %v1013_v31 = vld [vmem:[#allocation2 + $0x20] sm:$0xff] }
0x1769   :  { %v1250_v4 = vpop.f32.mrb[20].mxu0 }
0x176a   :  { %v1256_v5 = vadd.f32 %v1250_v4, %v1094_v27  ;;  %v2025_v7 = vpop.f32.mrb[21].mxu0 }
0x176b   :  { %v1253_v8 = vpop.f32.mrb[22].mxu0 }
0x176c   :  { %v1257_v1 = vmul.f32 %v1256_v5, %v2505_v26  ;;  %v2026_v51 = vpop.f32.mrb[23].mxu0 }
0x176e   :  { %2166 = vtanh.f32 %v1257_v1 }
0x1778   :  { %v2167_v16 = vpop.eup %2166 }
0x1779   :  { %1263 = vrot.lane.b32.xlu1 %v2167_v16, %s2336_s21  ;;  %v1259_v6 = vadd.f32 1.0, %v2167_v16 }
0x177b   :  { %v1260_v9 = vmul.f32 0.5, %v1259_v6 }
0x177d   :  { %v1261_v13 = vmul.f32 %v1260_v9, %v1201_v46 }
0x17eb   :  { %v1264_v11 = vpop.permute.xlu1 %1263 }
0x17ec   :  { %v1266_v12 = vmul.f32 %v1264_v11, %v1260_v9 }
0x17ee   :  { %1268 = vrot.lane.b32.xlu1 %v1266_v12, %s2345_s3 }
0x1860   :  { %v1269_v14 = vpop.permute.xlu1 %1268 }
0x1861   :  { %v1271_v18 = vadd.f32 %v1269_v14, %v1261_v13 }
0x1863   :  { %2168 = vtanh.f32 %v1271_v18 }
0x186d   :  { %v2169_v21 = vpop.eup %2168 }
0x186e   :  { %1274 = vrot.lane.b32.xlu1 %v2169_v21, %s2336_s21 }
0x1872   :  { %823 = vrot.lane.b32.xlu1 %v2595_v43, %s2345_s3  ;;  %v1015_v43 = vld [vmem:[#allocation2 + $0x30] sm:$0xff] }
0x1876   :  { %1005 = vrot.lane.b32.xlu1 %v1003_v23, %s2345_s3 }
0x18e0   :  { %v1275_v10 = vpop.permute.xlu1 %1274 }
0x18e1   :  { %v1277_v25 = vmul.f32 %v1275_v10, %v1260_v9 }
0x18e3   :  { %v1279_v28 = vpack.c.bf16 %v1277_v25, %v1277_v25 }
0x18e4   :  { %v824_v29 = vpop.permute.xlu1 %823 }
0x18e5   :  { %826 = vst.msk [vmem:[#allocation2 + $0x28] sm:$0xff] %vm301_vm4, %v824_v29  ;;  %1281 = vrot.lane.b32.xlu0 %v1279_v28, %s2345_s3 }
0x18e8   :  { %v1006_v30 = vpop.permute.xlu1 %1005 }
0x18e9   :  { %1008 = vst.msk [vmem:[#allocation2 + $0x38] sm:$0xff] %vm301_vm4, %v1006_v30 }
0x18ec   :  { %v1014_v33 = vld [vmem:[#allocation2 + $0x28] sm:$0xff] }
0x18ed   :  { %v1019_v34 = vpack.c.bf16 %v1014_v33, %v1013_v31 }
0x18ef   :  { %2007 = vmatprep.mubr.msk.bf16.mxu1 %vm301_vm4, %v1019_v34 }
0x18f0   :  { %v1016_v35 = vld [vmem:[#allocation2 + $0x38] sm:$0xff] }
0x18f1   :  { %v1020_v36 = vpack.c.bf16 %v1016_v35, %v1015_v43 }
0x18f3   :  { %2008 = vmatmul.mubr.msk.bf16.gmra.mrb[28].mxu1 %vm301_vm4, %v1020_v36 }
0x18f4   :  { %2031 = vmatprep.mubr.msk.bf16.mxu1 %vm2342_vm0, %v2341_v0 }
0x1957   :  { %v1282_v37 = vpop.permute.xlu0 %1281 }
0x1958   :  { %2032 = vmatmul.mubr.msk.bf16.vlgmr.msra.gmra.mrb[32].mxu1 %vm301_vm4, %v1282_v37 }
0x1959   :  { %2044 = vmatpush3.bf16.msra.mxu1 %v2634_v15  ;;  %2047 = vmatprep.mubr.msk.bf16.mxu1 %vm2342_vm0, %v2341_v0 }
0x195a   :  { %2045 = vmatprep.subr.bf16.mxu1 %v2341_v0 }
0x195d   :  { %2046 = vmatpush3.bf16.msra.mxu1 %v2642_v17 }
0x195e   :  { %2059 = vmatprep.subr.bf16.mxu1 %v2341_v0 }
0x19c6   :  { %v2717_v38 = vpop.f32.mrb[28].mxu1 }
0x19c7   :  { %v2719_v39 = vpop.f32.mrb[29].mxu1 }
0x19c8   :  { %v2721_v20 = vpop.f32.mrb[30].mxu1 }
0x19c9   :  { %v2723_v55 = vpop.f32.mrb[31].mxu1 }
0x1a2b   :  { %v1320_v41 = vpop.f32.mrb[32].mxu1 }
0x1a2c   :  { %v1326_v44 = vadd.f32 %v1320_v41, %v1099_v40  ;;  %v2033_v24 = vpop.f32.mrb[33].mxu1 }
0x1a2d   :  { %v1323_v45 = vpop.f32.mrb[34].mxu1 }
0x1a2e   :  { %v1327_v46 = vmul.f32 %v1326_v44, %v2505_v26  ;;  %v2034_v47 = vpop.f32.mrb[35].mxu1  ;;  %v1110_v45 = vadd.f32 %v2669_v32, %v2723_v55 }
0x1a30   :  { %2170 = vtanh.f32 %v1327_v46 }
0x1a3a   :  { %v2171_v48 = vpop.eup %2170 }
0x1a3b   :  { %1333 = vrot.lane.b32.xlu1 %v2171_v48, %s2336_s21  ;;  %v1329_v49 = vadd.f32 1.0, %v2171_v48 }
0x1a3d   :  { %v1330_v50 = vmul.f32 0.5, %v1329_v49 }
0x1a3f   :  { %v1331_v56 = vmul.f32 %v1330_v50, %v1271_v18  ;;  %v1107_v18 = vadd.f32 %v2669_v32, %v2719_v39 }
0x1aad   :  { %v1334_v52 = vpop.permute.xlu1 %1333 }
0x1aae   :  { %v1336_v54 = vmul.f32 %v1334_v52, %v1330_v50 }
0x1ab0   :  { %1338 = vrot.lane.b32.xlu0 %v1336_v54, %s2345_s3 }
0x1b22   :  { %v1339_v57 = vpop.permute.xlu0 %1338 }
0x1b23   :  { %v1341_v19 = vadd.f32 %v1339_v57, %v1331_v56 }
0x1b25   :  { %2172 = vtanh.f32 %v1341_v19 }
0x1b2f   :  { %v2173_v58 = vpop.eup %2172 }
0x1b30   :  { %1344 = vrot.lane.b32.xlu1 %v2173_v58, %s2336_s21 }
0x1ba2   :  { %v1345_v59 = vpop.permute.xlu1 %1344 }
0x1ba3   :  { %v1347_v53 = vmul.f32 %v1345_v59, %v1330_v50 }
0x1ba5   :  { %v1349_v60 = vpack.c.bf16 %v1347_v53, %v1347_v53 }
0x1ba7   :  { %1351 = vrot.lane.b32.xlu0 %v1349_v60, %s2345_s3 }
0x1c19   :  { %v1352_v62 = vpop.permute.xlu0 %1351 }
0x1c1a   :  { %2040 = vmatmul.mubr.msk.bf16.vlgmr.msra.gmra.mrb[24].mxu0 %vm301_vm4, %v1352_v62 }
0x1c1b   :  { %2052 = vmatpush3.bf16.msra.mxu0 %v2634_v15  ;;  %2055 = vmatprep.mubr.msk.bf16.mxu0 %vm2342_vm0, %v2341_v0 }
0x1c1c   :  { %2053 = vmatprep.subr.bf16.mxu0 %v2341_v0 }
0x1c1f   :  { %2054 = vmatpush3.bf16.msra.mxu0 %v2642_v17 }
0x1c20   :  { %2067 = vmatprep.subr.bf16.mxu0 %v2341_v0 }
0x1ced   :  { %v1390_v2 = vpop.f32.mrb[24].mxu0 }
0x1cee   :  { %v1396_v61 = vadd.f32 %v1390_v2, %v1102_v63  ;;  %v2041_v3 = vpop.f32.mrb[25].mxu0  ;;  %v1115_v2 = vadd.f32 %v2717_v38, %v2669_v32 }
0x1cef   :  { %v1393_v42 = vpop.f32.mrb[26].mxu0 }
0x1cf0   :  { %v1397_v27 = vmul.f32 %v1396_v61, %v2505_v26  ;;  %v2042_v4 = vpop.f32.mrb[27].mxu0 }
0x1cf2   :  { %2174 = vtanh.f32 %v1397_v27 }
0x1cfc   :  { %v2175_v5 = vpop.eup %2174 }
0x1cfd   :  { %1403 = vrot.lane.b32.xlu1 %v2175_v5, %s2336_s21  ;;  %v1399_v7 = vadd.f32 1.0, %v2175_v5 }
0x1cff   :  { %v1400_v8 = vmul.f32 0.5, %v1399_v7 }
0x1d01   :  { %v1401_v16 = vmul.f32 %v1400_v8, %v1341_v19 }
0x1d6f   :  { %v1404_v1 = vpop.permute.xlu1 %1403 }
0x1d70   :  { %v1406_v51 = vmul.f32 %v1404_v1, %v1400_v8 }
0x1d72   :  { %1408 = vrot.lane.b32.xlu0 %v1406_v51, %s2345_s3 }
0x1de4   :  { %v1409_v6 = vpop.permute.xlu0 %1408 }
0x1de5   :  { %v1411_v22 = vadd.f32 %v1409_v6, %v1401_v16 }
0x1de7   :  { %2176 = vtanh.f32 %v1411_v22 }
0x1df1   :  { %v2177_v9 = vpop.eup %2176 }
0x1df2   :  { %1414 = vrot.lane.b32.xlu1 %v2177_v9, %s2336_s21 }
0x1e64   :  { %v1415_v11 = vpop.permute.xlu1 %1414 }
0x1e65   :  { %v1417_v12 = vmul.f32 %v1415_v11, %v1400_v8 }
0x1e67   :  { %v1419_v13 = vpack.c.bf16 %v1417_v12, %v1417_v12 }
0x1e69   :  { %1421 = vrot.lane.b32.xlu0 %v1419_v13, %s2345_s3 }
0x1edb   :  { %v1422_v14 = vpop.permute.xlu0 %1421 }
0x1edc   :  { %2048 = vmatmul.mubr.msk.bf16.vlgmr.msra.gmra.mrb[36].mxu1 %vm301_vm4, %v1422_v14 }
0x1edd   :  { %2060 = vmatpush3.bf16.msra.mxu1 %v2634_v15  ;;  %2063 = vmatprep.mubr.msk.bf16.mxu1 %vm2342_vm0, %v2341_v0 }
0x1ede   :  { %2061 = vmatprep.subr.bf16.mxu1 %v2341_v0 }
0x1ee1   :  { %2062 = vmatpush3.bf16.msra.mxu1 %v2642_v17 }
0x1ee2   :  { %2075 = vmatprep.subr.bf16.mxu1 %v2341_v0 }
0x1faf   :  { %v1460_v21 = vpop.f32.mrb[36].mxu1 }
0x1fb0   :  { %v1466_v23 = vadd.f32 %v1460_v21, %v1107_v18  ;;  %v2049_v10 = vpop.f32.mrb[37].mxu1  ;;  %v1118_v18 = vadd.f32 %v2721_v20, %v2669_v32  ;;  %v2128_v20 = vld [vmem:[#allocation12] sm:$0xff]  }
0x1fb1   :  { %v1463_v25 = vpop.f32.mrb[38].mxu1 }
0x1fb2   :  { %v1467_v28 = vmul.f32 %v1466_v23, %v2505_v26  ;;  %v2050_v29 = vpop.f32.mrb[39].mxu1 }
0x1fb4   :  { %2178 = vtanh.f32 %v1467_v28 }
0x1fbe   :  { %v2179_v30 = vpop.eup %2178 }
0x1fbf   :  { %1473 = vrot.lane.b32.xlu1 %v2179_v30, %s2336_s21  ;;  %v1469_v31 = vadd.f32 1.0, %v2179_v30 }
0x1fc1   :  { %v1470_v33 = vmul.f32 0.5, %v1469_v31 }
0x1fc3   :  { %v1471_v35 = vmul.f32 %v1470_v33, %v1411_v22 }
0x2031   :  { %v1474_v34 = vpop.permute.xlu1 %1473 }
0x2032   :  { %v1476_v43 = vmul.f32 %v1474_v34, %v1470_v33 }
0x2034   :  { %1478 = vrot.lane.b32.xlu0 %v1476_v43, %s2345_s3 }
0x20a6   :  { %v1479_v36 = vpop.permute.xlu0 %1478 }
0x20a7   :  { %v1481_v37 = vadd.f32 %v1479_v36, %v1471_v35 }
0x20a9   :  { %2180 = vtanh.f32 %v1481_v37 }
0x20b3   :  { %v2181_v39 = vpop.eup %2180 }
0x20b4   :  { %1484 = vrot.lane.b32.xlu1 %v2181_v39, %s2336_s21 }
0x2126   :  { %v1485_v40 = vpop.permute.xlu1 %1484 }
0x2127   :  { %v1487_v41 = vmul.f32 %v1485_v40, %v1470_v33 }
0x2129   :  { %v1489_v44 = vpack.c.bf16 %v1487_v41, %v1487_v41 }
0x212b   :  { %1491 = vrot.lane.b32.xlu0 %v1489_v44, %s2345_s3 }
0x219d   :  { %v1492_v24 = vpop.permute.xlu0 %1491 }
0x219e   :  { %2056 = vmatmul.mubr.msk.bf16.vlgmr.msra.gmra.mrb[28].mxu0 %vm301_vm4, %v1492_v24  ;;  %v1838_v24 = vld [vmem:[%s2816_s8] ss:$0 sm:$0xff] }
0x219f   :  { %2068 = vmatpush3.bf16.msra.mxu0 %v2634_v15  ;;  %2071 = vmatprep.mubr.msk.bf16.mxu0 %vm2342_vm0, %v2341_v0 }
0x21a0   :  { %2069 = vmatprep.subr.bf16.mxu0 %v2341_v0 }
0x21a3   :  { %2070 = vmatpush3.bf16.msra.mxu0 %v2642_v17 }
0x2271   :  { %v1530_v46 = vpop.f32.mrb[28].mxu0 }
0x2272   :  { %v1536_v47 = vadd.f32 %v1530_v46, %v1110_v45  ;;  %v2057_v48 = vpop.f32.mrb[29].mxu0 }
0x2273   :  { %v1533_v49 = vpop.f32.mrb[30].mxu0 }
0x2274   :  { %v1537_v50 = vmul.f32 %v1536_v47, %v2505_v26  ;;  %v2058_v52 = vpop.f32.mrb[31].mxu0 }
0x2276   :  { %2182 = vtanh.f32 %v1537_v50 }
0x2280   :  { %v2183_v54 = vpop.eup %2182 }
0x2281   :  { %1543 = vrot.lane.b32.xlu1 %v2183_v54, %s2336_s21  ;;  %v1539_v15 = vadd.f32 1.0, %v2183_v54 }
0x2283   :  { %v1540_v56 = vmul.f32 0.5, %v1539_v15 }
0x2285   :  { %v1541_v17 = vmul.f32 %v1540_v56, %v1481_v37  ;;  %v2129_v37 = vld [vmem:[#allocation12 + $0x8] sm:$0xff]  }
0x22f3   :  { %v1544_v57 = vpop.permute.xlu1 %1543 }
0x22f4   :  { %v1546_v19 = vmul.f32 %v1544_v57, %v1540_v56 }
0x22f6   :  { %1548 = vrot.lane.b32.xlu0 %v1546_v19, %s2345_s3 }
0x2368   :  { %v1549_v58 = vpop.permute.xlu0 %1548 }
0x2369   :  { %v1551_v55 = vadd.f32 %v1549_v58, %v1541_v17 }
0x236b   :  { %2184 = vtanh.f32 %v1551_v55 }
0x2375   :  { %v2185_v59 = vpop.eup %2184 }
0x2376   :  { %1554 = vrot.lane.b32.xlu1 %v2185_v59, %s2336_s21 }
0x23e8   :  { %v1555_v53 = vpop.permute.xlu1 %1554 }
0x23e9   :  { %v1557_v60 = vmul.f32 %v1555_v53, %v1540_v56 }
0x23eb   :  { %v1559_v62 = vpack.c.bf16 %v1557_v60, %v1557_v60 }
0x23ed   :  { %1561 = vrot.lane.b32.xlu0 %v1559_v62, %s2345_s3 }
0x245f   :  { %v1562_v63 = vpop.permute.xlu0 %1561 }
0x2460   :  { %2064 = vmatmul.mubr.msk.bf16.vlgmr.msra.gmra.mrb[40].mxu1 %vm301_vm4, %v1562_v63 }
0x2461   :  { %2079 = vmatprep.mubr.msk.bf16.mxu1 %vm2342_vm0, %v2341_v0  ;;  %2076 = vmatpush3.bf16.msra.mxu1 %v2128_v20 }
0x2462   :  { %2077 = vmatprep.subr.bf16.mxu1 %v2341_v0 }
0x2465   :  { %2078 = vmatpush3.bf16.msra.mxu1 %v2129_v37 }
0x2533   :  { %v1600_v61 = vpop.f32.mrb[40].mxu1 }
0x2534   :  { %v1606_v3 = vadd.f32 %v1600_v61, %v1115_v2  ;;  %v2065_v42 = vpop.f32.mrb[41].mxu1 }
0x2535   :  { %v1603_v27 = vpop.f32.mrb[42].mxu1 }
0x2536   :  { %v1607_v4 = vmul.f32 %v1606_v3, %v2505_v26  ;;  %v2066_v5 = vpop.f32.mrb[43].mxu1 }
0x2538   :  { %2186 = vtanh.f32 %v1607_v4 }
0x2542   :  { %v2187_v7 = vpop.eup %2186 }
0x2543   :  { %1613 = vrot.lane.b32.xlu1 %v2187_v7, %s2336_s21  ;;  %v1609_v8 = vadd.f32 1.0, %v2187_v7 }
0x2545   :  { %v1610_v1 = vmul.f32 0.5, %v1609_v8 }
0x2547   :  { %v1611_v6 = vmul.f32 %v1610_v1, %v1551_v55 }
0x25b5   :  { %v1614_v51 = vpop.permute.xlu1 %1613 }
0x25b6   :  { %v1616_v16 = vmul.f32 %v1614_v51, %v1610_v1 }
0x25b8   :  { %1618 = vrot.lane.b32.xlu0 %v1616_v16, %s2345_s3 }
0x262a   :  { %v1619_v22 = vpop.permute.xlu0 %1618 }
0x262b   :  { %v1621_v38 = vadd.f32 %v1619_v22, %v1611_v6 }
0x262d   :  { %2188 = vtanh.f32 %v1621_v38 }
0x2637   :  { %v2189_v9 = vpop.eup %2188 }
0x2638   :  { %1624 = vrot.lane.b32.xlu1 %v2189_v9, %s2336_s21 }
0x26aa   :  { %v1625_v11 = vpop.permute.xlu1 %1624 }
0x26ab   :  { %v1627_v12 = vmul.f32 %v1625_v11, %v1610_v1 }
0x26ad   :  { %v1629_v13 = vpack.c.bf16 %v1627_v12, %v1627_v12 }
0x26af   :  { %1631 = vrot.lane.b32.xlu0 %v1629_v13, %s2345_s3 }
0x2721   :  { %v1632_v14 = vpop.permute.xlu0 %1631 }
0x2722   :  { %2072 = vmatmul.mubr.msk.bf16.vlgmr.msra.gmra.mrb[32].mxu0 %vm301_vm4, %v1632_v14 }
0x27f5   :  { %v1670_v21 = vpop.f32.mrb[32].mxu0 }
0x27f6   :  { %v1676_v23 = vadd.f32 %v1670_v21, %v1118_v18  ;;  %v2073_v10 = vpop.f32.mrb[33].mxu0 }
0x27f7   :  { %v1673_v25 = vpop.f32.mrb[34].mxu0 }
0x27f8   :  { %v1677_v28 = vmul.f32 %v1676_v23, %v2505_v26  ;;  %v2074_v29 = vpop.f32.mrb[35].mxu0 }
0x27fa   :  { %2190 = vtanh.f32 %v1677_v28 }
0x2804   :  { %v2191_v30 = vpop.eup %2190 }
0x2805   :  { %1683 = vrot.lane.b32.xlu1 %v2191_v30, %s2336_s21  ;;  %v1679_v31 = vadd.f32 1.0, %v2191_v30 }
0x2807   :  { %v1680_v33 = vmul.f32 0.5, %v1679_v31 }
0x2809   :  { %v1681_v35 = vmul.f32 %v1680_v33, %v1621_v38 }
0x2877   :  { %v1684_v34 = vpop.permute.xlu1 %1683 }
0x2878   :  { %v1686_v43 = vmul.f32 %v1684_v34, %v1680_v33 }
0x287a   :  { %1688 = vrot.lane.b32.xlu0 %v1686_v43, %s2345_s3 }
0x28ec   :  { %v1689_v36 = vpop.permute.xlu0 %1688 }
0x28ed   :  { %v1691_v32 = vadd.f32 %v1689_v36, %v1681_v35 }
0x28ef   :  { %2192 = vtanh.f32 %v1691_v32 }
0x28f9   :  { %v2193_v26 = vpop.eup %2192 }
0x28fa   :  { %1694 = vrot.lane.b32.xlu1 %v2193_v26, %s2336_s21  ;;  %s2304_s21 = scalar_lea.vmem %s1776_s10, 128 }
0x28fb   :  { %p2305_p12 = scmp.ne.s32.totalorder %s1776_s10, %s2304_s21  ;;  %p2310_p0 = scmp.lt.s32.totalorder %s2304_s21, %s2304_s21 }
0x28fd   :  { %p2311_p1 = por %p2310_p0, %p2309_p13 }
0x28ff   :  { %p2312_p2 = pnand %p2311_p1, %p2305_p12 }
0x296c   :  { %v1695_v39 = vpop.permute.xlu1 %1694 }
0x296d   :  { %v1697_v40 = vmul.f32 %v1695_v39, %v1680_v33 }
0x296f   :  { %v1698_v41 = vpack.c.bf16 %v1697_v40, %v1697_v40 }
0x2971   :  { %1711 = vrot.lane.b32.xlu0 %v1698_v41, %s2345_s3 }
0x29e3   :  { %v1712_v44 = vpop.permute.xlu0 %1711 }
0x29e4   :  { %2080 = vmatmul.mubr.msk.bf16.vlgmr.msra.gmra.mrb[44].mxu1 %vm301_vm4, %v1712_v44 }
0x2ab7   :  { %v1762_v45 = vpop.f32.mrb[44].mxu1 }
0x2ab8   :  { %v1763_v0 = vadd.f32 %v1838_v24, %v1762_v45  ;;  %v2081_v46 = vpop.f32.mrb[45].mxu1 }
0x2ab9   :  { %v1765_v47 = vpop.f32.mrb[46].mxu1 }
0x2aba   :  { %1768 = vst [vmem:[#allocation13] sm:$0xff] %v1763_v0  ;;  %v2082_v48 = vpop.f32.mrb[47].mxu1 }
0x2abb   :  { %2315 = shalt.err (!%p2312_p2)
}
0x2abc   :  { %s2316_s8 = scalar_lea.hbm %s2817_s9, 128 }
0x2abd   :  { %p2317_p3 = scmp.ne.s32.totalorder %s2817_s9, %s2316_s8  ;;  %p2320_p4 = scmp.lt.u32.totalorder %s2316_s8, %s2817_s9 }
0x2abf   :  { %p2322_p5 = pnand %p2320_p4, %p2317_p3 }
0x2ac1   :  { %2325 = shalt.err (!%p2322_p5)
}
0x2ac2   :  { %1778 = dma.vmem_to_hbm [thread:$0]  %s1776_s10, 128, %s2817_s9, [#allocation6]  }
0x2ac3   :  { %2332 = dma.done.wait [#allocation6], 128  }
0x2ac4   :  { %2333 = vsyncadd [#allocation6], 4294967168 }
0x2ac5   :  { %1782 = vsyncpa [#allocation5], 1 }
0x2ac6   :  { %1783 = vsyncpa [#allocation8], 1 }
0x2ac7   :  { %1784 = vsyncpa [#allocation11], 1 }
0x2ac8   :  { %1785 = vsyncpa [#allocation6], 1 }

</bundles_post_ra>
